<compile_context>
chip_gen: v7x
topology: tpu7x:2x2x1
jax: 0.10.0
libtpu: 0.0.40
codegen_flags: <defaults>
</compile_context>

<pallas_src>
import jax
import jax.numpy as jnp
from jax import lax
from jax.experimental import pallas as pl
from jax.experimental.pallas import tpu as pltpu


def text_encoder_kernel(ids_ref, emb_ref, w_ih_ref, w_hh_ref, xg_b_ref,
                        hg_b_ref, o_ref, hfin_ref, xg_scratch, h_scratch):
    """Fused embedding gather + bidirectional GRU, single invocation."""
    T, Bp, H2 = o_ref.shape
    H = H2 // 2
    G = 3 * H
    TB = T * Bp
    V = emb_ref.shape[0]
    mm_dtype = w_hh_ref.dtype

    # ---- Fused embedding gather: one-hot (TB, V) @ (V, E) on the MXU ----
    ids = ids_ref[...]                                          # (TB, 1) int32
    token_iota = lax.broadcasted_iota(jnp.int32, (TB, V), 1)
    onehot = (token_iota == ids).astype(mm_dtype)               # (TB, V)
    x = jnp.dot(onehot, emb_ref[...],
                preferred_element_type=jnp.float32)             # (TB, E) f32

    # ---- Hoisted input projection, BOTH directions in one GEMM ----
    # xg_bias already folds b_ih (all gates) + b_hh for r,z.
    xg_all = jnp.dot(x.astype(mm_dtype), w_ih_ref[...],
                     preferred_element_type=jnp.float32) + xg_b_ref[...]
    xg_scratch[0] = xg_all[:, :G]       # forward  gates (r,z,n), row = t*Bp+b
    xg_scratch[1] = xg_all[:, G:]       # backward gates (r,z,n)

    h_scratch[...] = jnp.zeros_like(h_scratch)                  # (Bp, 2H)
    # b_hn (zeros elsewhere) broadcast hoisted out of the unrolled loop
    # (JAX does not CSE broadcast_in_dim).
    b_hg = jnp.broadcast_to(hg_b_ref[...], (Bp, 2 * G))

    def step(s, carry):
        h_prev = h_scratch[...]                                 # (Bp, 2H) f32
        # One block-diagonal recurrent matmul for BOTH directions:
        # (Bp, 2H) @ (2H, 6H) -> (Bp, 6H), f32 accumulate, b_hn added.
        hg = jnp.dot(h_prev.astype(mm_dtype), w_hh_ref[...],
                     preferred_element_type=jnp.float32) + b_hg

        row_f = pl.multiple_of(s * Bp, Bp)            # fwd reads time s
        row_b = pl.multiple_of((T - 1 - s) * Bp, Bp)  # bwd reads time T-1-s
        xg_f = xg_scratch[0, pl.ds(row_f, Bp), :]               # (Bp, 3H)
        xg_b = xg_scratch[1, pl.ds(row_b, Bp), :]               # (Bp, 3H)

        hg_f = hg[:, :G]
        hg_b = hg[:, G:]

        # Forward chain: r,z share one sigmoid push; b_hn stays inside r*(.)
        rz_f = jax.nn.sigmoid(xg_f[:, :2 * H] + hg_f[:, :2 * H])
        n_f = jnp.tanh(xg_f[:, 2 * H:] + rz_f[:, :H] * hg_f[:, 2 * H:])
        h_f = (1.0 - rz_f[:, H:]) * n_f + rz_f[:, H:] * h_prev[:, :H]

        # Backward chain (independent of forward -> latencies overlap).
        rz_b = jax.nn.sigmoid(xg_b[:, :2 * H] + hg_b[:, :2 * H])
        n_b = jnp.tanh(xg_b[:, 2 * H:] + rz_b[:, :H] * hg_b[:, 2 * H:])
        h_b = (1.0 - rz_b[:, H:]) * n_b + rz_b[:, H:] * h_prev[:, H:]

        h_scratch[:, :H] = h_f
        h_scratch[:, H:] = h_b

        # Emit final layout directly: fwd at time s, bwd at time T-1-s.
        o_ref[s, :, :H] = h_f.astype(o_ref.dtype)
        o_ref[T - 1 - s, :, H:] = h_b.astype(o_ref.dtype)
        return carry

    # T is small & static: full unroll gives the scheduler cross-iteration
    # visibility (step t+1's matmul overlaps step t's EUP/stores).
    lax.fori_loop(0, T, step, 0, unroll=True)

    hfin_ref[0] = h_scratch[:, :H].astype(hfin_ref.dtype)
    hfin_ref[1] = h_scratch[:, H:].astype(hfin_ref.dtype)


def text_encoder_forward(params, input_ids, *, matmul_dtype=jnp.bfloat16):
    """input_ids: (B, T, 1) int32. Returns (o: (T,B,2H) f32, h: (2,B,H) f32)."""
    emb_tbl = params["embedding"]                        # (V, E) f32
    w_ih_pt = params["w_ih"]                             # (2, 3H, E) PyTorch layout
    w_hh_pt = params["w_hh"]                             # (2, 3H, H)
    b_ih_pt = params["b_ih"]                             # (2, 3H)
    b_hh_pt = params["b_hh"]                             # (2, 3H)

    V, E = emb_tbl.shape
    H = w_hh_pt.shape[2]
    G = 3 * H
    B, T, _ = input_ids.shape

    # Pad batch to the f32 sublane count so vregs / MXU rows are filled.
    # (Padded rows index token 0; their garbage outputs are sliced off.)
    Bp = max(8, ((B + 7) // 8) * 8)
    ids = jnp.transpose(input_ids[:, :, 0], (1, 0))      # (T, B) time-major
    ids = jnp.pad(ids, ((0, 0), (0, Bp - B)))            # (T, Bp)
    ids = ids.reshape(T * Bp, 1).astype(jnp.int32)       # row = t*Bp + b

    # Gate-fused layouts (lane axis): [r,z,n]_fwd | [r,z,n]_bwd.
    w_ih_f = jnp.concatenate([w_ih_pt[0].T, w_ih_pt[1].T], axis=1)     # (E, 6H)
    zeros = jnp.zeros((H, G), jnp.float32)
    w_hh_f = jnp.concatenate(                                          # (2H, 6H)
        [jnp.concatenate([w_hh_pt[0].T, zeros], axis=1),               # block-diag
         jnp.concatenate([zeros, w_hh_pt[1].T], axis=1)], axis=0)

    def _xg_bias(d):   # b_ih (all gates) + b_hh for r,z (additive gates)
        return jnp.concatenate(
            [b_ih_pt[d, :2 * H] + b_hh_pt[d, :2 * H], b_ih_pt[d, 2 * H:]])

    def _hg_bias(d):   # only b_hn — must stay inside r * (...)
        return jnp.concatenate(
            [jnp.zeros((2 * H,), jnp.float32), b_hh_pt[d, 2 * H:]])

    xg_bias = jnp.concatenate([_xg_bias(0), _xg_bias(1)])[None, :]     # (1, 6H)
    hg_bias = jnp.concatenate([_hg_bias(0), _hg_bias(1)])[None, :]     # (1, 6H)

    def vspec():
        return pl.BlockSpec(memory_space=pltpu.MemorySpace.VMEM)

    o_pad, h_pad = pl.pallas_call(
        text_encoder_kernel,
        out_shape=(jax.ShapeDtypeStruct((T, Bp, 2 * H), jnp.float32),
                   jax.ShapeDtypeStruct((2, Bp, H), jnp.float32)),
        in_specs=[vspec() for _ in range(6)],
        out_specs=(vspec(), vspec()),
        scratch_shapes=[pltpu.VMEM((2, T * Bp, G), jnp.float32),  # x-projection
                        pltpu.VMEM((Bp, 2 * H), jnp.float32)],    # [h_f | h_b]
    )(ids,
      emb_tbl.astype(matmul_dtype),
      w_ih_f.astype(matmul_dtype),
      w_hh_f.astype(matmul_dtype),
      xg_bias.astype(jnp.float32),
      hg_bias.astype(jnp.float32))

    return o_pad[:, :B], h_pad[:, :B]


def init_params(key, src_dim, hid_dim, emb_dim):
    """Parameters kept in PyTorch nn.GRU layout (gate order r, z, n)."""
    k_emb, k_wih, k_whh, k_bih, k_bhh = jax.random.split(key, 5)
    scale = 1.0 / jnp.sqrt(jnp.float32(hid_dim))
    embedding = jax.random.normal(k_emb, (src_dim, emb_dim), jnp.float32)
    w_ih = jax.random.uniform(k_wih, (2, 3 * hid_dim, emb_dim),
                              jnp.float32, -scale, scale)
    w_hh = jax.random.uniform(k_whh, (2, 3 * hid_dim, hid_dim),
                              jnp.float32, -scale, scale)
    b_ih = jax.random.uniform(k_bih, (2, 3 * hid_dim), jnp.float32, -scale, scale)
    b_hh = jax.random.uniform(k_bhh, (2, 3 * hid_dim), jnp.float32, -scale, scale)
    return dict(embedding=embedding, w_ih=w_ih, w_hh=w_hh, b_ih=b_ih, b_hh=b_hh)


def text_encoder_reference(params, input_ids):
    """Pure-JAX f32 reference (PyTorch Embedding + nn.GRU semantics)."""
    emb = jnp.take(params["embedding"], input_ids[:, :, 0], axis=0)  # (B,T,E)
    x = jnp.transpose(emb, (1, 0, 2)).astype(jnp.float32)            # (T,B,E)
    T, B, _ = x.shape
    H = params["w_hh"].shape[2]

    def run_dir(d):
        xs = x if d == 0 else x[::-1]

        def step(h, x_t):
            gx = x_t @ params["w_ih"][d].T + params["b_ih"][d]
            gh = h @ params["w_hh"][d].T + params["b_hh"][d]
            r = jax.nn.sigmoid(gx[:, :H] + gh[:, :H])
            z = jax.nn.sigmoid(gx[:, H:2 * H] + gh[:, H:2 * H])
            n = jnp.tanh(gx[:, 2 * H:] + r * gh[:, 2 * H:])
            h_new = (1.0 - z) * n + z * h
            return h_new, h_new

        h0 = jnp.zeros((B, H), jnp.float32)
        h_last, outs = lax.scan(step, h0, xs)
        if d == 1:
            outs = outs[::-1]
        return outs, h_last

    o_f, h_f = run_dir(0)
    o_b, h_b = run_dir(1)
    return jnp.concatenate([o_f, o_b], axis=-1), jnp.stack([h_f, h_b], axis=0)


if __name__ == "__main__":
    src_dim, hid_dim, emb_dim, max_seq_len = 50, 32, 32, 8
    B, T = 2, 8

    key = jax.random.PRNGKey(0)
    k_params, k_input = jax.random.split(key)
    params = init_params(k_params, src_dim, hid_dim, emb_dim)
    input_ids = jax.random.randint(k_input, (B, T, 1), 0, src_dim,
                                   dtype=jnp.int32)

    o, h = text_encoder_forward(params, input_ids)
    o = jax.block_until_ready(o)
    h = jax.block_until_ready(h)

    assert o.shape == (T, B, 2 * hid_dim)
    assert h.shape == (2, B, hid_dim)

    # Correctness vs. pure-JAX f32 reference (bf16 MXU inputs -> relaxed atol).
    o_exp, h_exp = text_encoder_reference(params, input_ids)
    assert jnp.allclose(o, o_exp, atol=5e-2), float(jnp.max(jnp.abs(o - o_exp)))
    assert jnp.allclose(h, h_exp, atol=5e-2), float(jnp.max(jnp.abs(h - h_exp)))

    print("KERNEL_OK")
</pallas_src>

<mosaic_0001>
module attributes {stable_mosaic.version = 11 : i64} {
  func.func @text_encoder_kernel(%arg0: memref<64x1xi32, #tpu.memory_space<vmem>>, %arg1: memref<50x32xbf16, #tpu.memory_space<vmem>>, %arg2: memref<32x192xbf16, #tpu.memory_space<vmem>>, %arg3: memref<64x192xbf16, #tpu.memory_space<vmem>>, %arg4: memref<1x192xf32, #tpu.memory_space<vmem>>, %arg5: memref<1x192xf32, #tpu.memory_space<vmem>>, %arg6: memref<8x8x64xf32, #tpu.memory_space<vmem>>, %arg7: memref<2x8x32xf32, #tpu.memory_space<vmem>>, %arg8: memref<2x64x96xf32, #tpu.memory_space<vmem>>, %arg9: memref<8x64xf32, #tpu.memory_space<vmem>>) attributes {dimension_semantics = [], scalar_prefetch = 0 : i64, scratch_operands = 2 : i64, tpu.core_type = #tpu.core_type<tc>} {
    %c0 = arith.constant 0 : index
    %c0_0 = arith.constant 0 : index
    %0 = vector.load %arg0[%c0, %c0_0] : memref<64x1xi32, #tpu.memory_space<vmem>>, vector<64x1xi32>
    %1 = tpu.iota {dimensions = array<i32: 1>} : vector<64x50xi32>
    %2 = vector.broadcast %0 : vector<64x1xi32> to vector<64x50xi32>
    %3 = arith.cmpi eq, %1, %2 : vector<64x50xi32>
    %4 = arith.extui %3 : vector<64x50xi1> to vector<64x50xi32>
    %5 = arith.sitofp %4 : vector<64x50xi32> to vector<64x50xf32>
    %6 = arith.truncf %5 : vector<64x50xf32> to vector<64x50xbf16>
    %c0_1 = arith.constant 0 : index
    %c0_2 = arith.constant 0 : index
    %7 = vector.load %arg1[%c0_1, %c0_2] : memref<50x32xbf16, #tpu.memory_space<vmem>>, vector<50x32xbf16>
    %cst = arith.constant dense<0.000000e+00> : vector<64x32xf32>
    %8 = tpu.matmul %6, %7, %cst {dimension_numbers = #tpu.dot_dimension_numbers<[1], [0], [0], [1], [0, 0, 1, 1], [], []>} : vector<64x50xbf16>, vector<50x32xbf16>, vector<64x32xf32> -> vector<64x32xf32>
    %9 = arith.truncf %8 : vector<64x32xf32> to vector<64x32xbf16>
    %c0_3 = arith.constant 0 : index
    %c0_4 = arith.constant 0 : index
    %10 = vector.load %arg2[%c0_3, %c0_4] : memref<32x192xbf16, #tpu.memory_space<vmem>>, vector<32x192xbf16>
    %cst_5 = arith.constant dense<0.000000e+00> : vector<64x192xf32>
    %11 = tpu.matmul %9, %10, %cst_5 {dimension_numbers = #tpu.dot_dimension_numbers<[1], [0], [0], [1], [0, 0, 1, 1], [], []>} : vector<64x32xbf16>, vector<32x192xbf16>, vector<64x192xf32> -> vector<64x192xf32>
    %c0_6 = arith.constant 0 : index
    %c0_7 = arith.constant 0 : index
    %12 = vector.load %arg4[%c0_6, %c0_7] : memref<1x192xf32, #tpu.memory_space<vmem>>, vector<1x192xf32>
    %13 = vector.broadcast %12 : vector<1x192xf32> to vector<64x192xf32>
    %14 = arith.addf %11, %13 : vector<64x192xf32>
    %15 = vector.extract_strided_slice %14 {offsets = [0, 0], sizes = [64, 96], strides = [1, 1]} : vector<64x192xf32> to vector<64x96xf32>
    %c0_8 = arith.constant 0 : index
    %c0_9 = arith.constant 0 : index
    %c0_10 = arith.constant 0 : index
    %16 = vector.load %arg8[%c0_8, %c0_9, %c0_10] : memref<2x64x96xf32, #tpu.memory_space<vmem>>, vector<1x64x96xf32>
    %17 = vector.shape_cast %16 : vector<1x64x96xf32> to vector<64x96xf32>
    %18 = vector.shape_cast %15 : vector<64x96xf32> to vector<1x64x96xf32>
    tpu.vector_store %arg8[%c0_8, %c0_9, %c0_10], %18 {strides = array<i32>} : memref<2x64x96xf32, #tpu.memory_space<vmem>>, vector<1x64x96xf32>,
    %19 = vector.extract_strided_slice %14 {offsets = [0, 96], sizes = [64, 96], strides = [1, 1]} : vector<64x192xf32> to vector<64x96xf32>
    %c1 = arith.constant 1 : index
    %c0_11 = arith.constant 0 : index
    %c0_12 = arith.constant 0 : index
    %20 = vector.load %arg8[%c1, %c0_11, %c0_12] : memref<2x64x96xf32, #tpu.memory_space<vmem>>, vector<1x64x96xf32>
    %21 = vector.shape_cast %20 : vector<1x64x96xf32> to vector<64x96xf32>
    %22 = vector.shape_cast %19 : vector<64x96xf32> to vector<1x64x96xf32>
    tpu.vector_store %arg8[%c1, %c0_11, %c0_12], %22 {strides = array<i32>} : memref<2x64x96xf32, #tpu.memory_space<vmem>>, vector<1x64x96xf32>,
    %cst_13 = arith.constant 0.000000e+00 : f32
    %23 = vector.broadcast %cst_13 : f32 to vector<8x64xf32>
    %c0_14 = arith.constant 0 : index
    %c0_15 = arith.constant 0 : index
    %24 = vector.load %arg9[%c0_14, %c0_15] : memref<8x64xf32, #tpu.memory_space<vmem>>, vector<8x64xf32>
    tpu.vector_store %arg9[%c0_14, %c0_15], %23 {strides = array<i32>} : memref<8x64xf32, #tpu.memory_space<vmem>>, vector<8x64xf32>,
    %c0_16 = arith.constant 0 : index
    %c0_17 = arith.constant 0 : index
    %25 = vector.load %arg5[%c0_16, %c0_17] : memref<1x192xf32, #tpu.memory_space<vmem>>, vector<1x192xf32>
    %26 = vector.shape_cast %25 : vector<1x192xf32> to vector<1x192xf32>
    %27 = vector.broadcast %26 : vector<1x192xf32> to vector<8x192xf32>
    %c0_i32 = arith.constant 0 : i32
    %c0_18 = arith.constant 0 : index
    %c0_19 = arith.constant 0 : index
    %28 = vector.load %arg9[%c0_18, %c0_19] : memref<8x64xf32, #tpu.memory_space<vmem>>, vector<8x64xf32>
    %29 = arith.truncf %28 : vector<8x64xf32> to vector<8x64xbf16>
    %c0_20 = arith.constant 0 : index
    %c0_21 = arith.constant 0 : index
    %30 = vector.load %arg3[%c0_20, %c0_21] : memref<64x192xbf16, #tpu.memory_space<vmem>>, vector<64x192xbf16>
    %cst_22 = arith.constant dense<0.000000e+00> : vector<8x192xf32>
    %31 = tpu.matmul %29, %30, %cst_22 {dimension_numbers = #tpu.dot_dimension_numbers<[1], [0], [0], [1], [0, 0, 1, 1], [], []>} : vector<8x64xbf16>, vector<64x192xbf16>, vector<8x192xf32> -> vector<8x192xf32>
    %32 = arith.addf %31, %27 : vector<8x192xf32>
    %c8_i32 = arith.constant 8 : i32
    %33 = arith.muli %c0_i32, %c8_i32 : i32
    %34 = tpu.assume_multiple %33, 8 : i32
    %c7_i32 = arith.constant 7 : i32
    %35 = arith.subi %c7_i32, %c0_i32 : i32
    %c8_i32_23 = arith.constant 8 : i32
    %36 = arith.muli %35, %c8_i32_23 : i32
    %37 = tpu.assume_multiple %36, 8 : i32
    %c0_24 = arith.constant 0 : index
    %38 = arith.index_cast %34 : i32 to index
    %c0_25 = arith.constant 0 : index
    %39 = vector.load %arg8[%c0_24, %38, %c0_25] : memref<2x64x96xf32, #tpu.memory_space<vmem>>, vector<1x8x96xf32>
    %40 = vector.shape_cast %39 : vector<1x8x96xf32> to vector<8x96xf32>
    %c1_26 = arith.constant 1 : index
    %41 = arith.index_cast %37 : i32 to index
    %c0_27 = arith.constant 0 : index
    %42 = vector.load %arg8[%c1_26, %41, %c0_27] : memref<2x64x96xf32, #tpu.memory_space<vmem>>, vector<1x8x96xf32>
    %43 = vector.shape_cast %42 : vector<1x8x96xf32> to vector<8x96xf32>
    %44 = vector.extract_strided_slice %32 {offsets = [0, 0], sizes = [8, 96], strides = [1, 1]} : vector<8x192xf32> to vector<8x96xf32>
    %45 = vector.extract_strided_slice %32 {offsets = [0, 96], sizes = [8, 96], strides = [1, 1]} : vector<8x192xf32> to vector<8x96xf32>
    %46 = vector.extract_strided_slice %40 {offsets = [0, 0], sizes = [8, 64], strides = [1, 1]} : vector<8x96xf32> to vector<8x64xf32>
    %47 = vector.extract_strided_slice %44 {offsets = [0, 0], sizes = [8, 64], strides = [1, 1]} : vector<8x96xf32> to vector<8x64xf32>
    %48 = arith.addf %46, %47 : vector<8x64xf32>
    %49 = arith.negf %48 : vector<8x64xf32>
    %50 = math.exp %49 : vector<8x64xf32>
    %cst_28 = arith.constant 1.000000e+00 : f32
    %51 = vector.broadcast %cst_28 : f32 to vector<8x64xf32>
    %52 = arith.addf %51, %50 : vector<8x64xf32>
    %53 = arith.divf %51, %52 : vector<8x64xf32>
    %54 = vector.extract_strided_slice %40 {offsets = [0, 64], sizes = [8, 32], strides = [1, 1]} : vector<8x96xf32> to vector<8x32xf32>
    %55 = vector.extract_strided_slice %53 {offsets = [0, 0], sizes = [8, 32], strides = [1, 1]} : vector<8x64xf32> to vector<8x32xf32>
    %56 = vector.extract_strided_slice %44 {offsets = [0, 64], sizes = [8, 32], strides = [1, 1]} : vector<8x96xf32> to vector<8x32xf32>
    %57 = arith.mulf %55, %56 : vector<8x32xf32>
    %58 = arith.addf %54, %57 : vector<8x32xf32>
    %59 = math.tanh %58 : vector<8x32xf32>
    %60 = vector.extract_strided_slice %53 {offsets = [0, 32], sizes = [8, 32], strides = [1, 1]} : vector<8x64xf32> to vector<8x32xf32>
    %cst_29 = arith.constant 1.000000e+00 : f32
    %61 = vector.broadcast %cst_29 : f32 to vector<8x32xf32>
    %62 = arith.subf %61, %60 : vector<8x32xf32>
    %63 = arith.mulf %62, %59 : vector<8x32xf32>
    %64 = vector.extract_strided_slice %53 {offsets = [0, 32], sizes = [8, 32], strides = [1, 1]} : vector<8x64xf32> to vector<8x32xf32>
    %65 = vector.extract_strided_slice %28 {offsets = [0, 0], sizes = [8, 32], strides = [1, 1]} : vector<8x64xf32> to vector<8x32xf32>
    %66 = arith.mulf %64, %65 : vector<8x32xf32>
    %67 = arith.addf %63, %66 : vector<8x32xf32>
    %68 = vector.extract_strided_slice %43 {offsets = [0, 0], sizes = [8, 64], strides = [1, 1]} : vector<8x96xf32> to vector<8x64xf32>
    %69 = vector.extract_strided_slice %45 {offsets = [0, 0], sizes = [8, 64], strides = [1, 1]} : vector<8x96xf32> to vector<8x64xf32>
    %70 = arith.addf %68, %69 : vector<8x64xf32>
    %71 = arith.negf %70 : vector<8x64xf32>
    %72 = math.exp %71 : vector<8x64xf32>
    %cst_30 = arith.constant 1.000000e+00 : f32
    %73 = vector.broadcast %cst_30 : f32 to vector<8x64xf32>
    %74 = arith.addf %73, %72 : vector<8x64xf32>
    %75 = arith.divf %73, %74 : vector<8x64xf32>
    %76 = vector.extract_strided_slice %43 {offsets = [0, 64], sizes = [8, 32], strides = [1, 1]} : vector<8x96xf32> to vector<8x32xf32>
    %77 = vector.extract_strided_slice %75 {offsets = [0, 0], sizes = [8, 32], strides = [1, 1]} : vector<8x64xf32> to vector<8x32xf32>
    %78 = vector.extract_strided_slice %45 {offsets = [0, 64], sizes = [8, 32], strides = [1, 1]} : vector<8x96xf32> to vector<8x32xf32>
    %79 = arith.mulf %77, %78 : vector<8x32xf32>
    %80 = arith.addf %76, %79 : vector<8x32xf32>
    %81 = math.tanh %80 : vector<8x32xf32>
    %82 = vector.extract_strided_slice %75 {offsets = [0, 32], sizes = [8, 32], strides = [1, 1]} : vector<8x64xf32> to vector<8x32xf32>
    %cst_31 = arith.constant 1.000000e+00 : f32
    %83 = vector.broadcast %cst_31 : f32 to vector<8x32xf32>
    %84 = arith.subf %83, %82 : vector<8x32xf32>
    %85 = arith.mulf %84, %81 : vector<8x32xf32>
    %86 = vector.extract_strided_slice %75 {offsets = [0, 32], sizes = [8, 32], strides = [1, 1]} : vector<8x64xf32> to vector<8x32xf32>
    %87 = vector.extract_strided_slice %28 {offsets = [0, 32], sizes = [8, 32], strides = [1, 1]} : vector<8x64xf32> to vector<8x32xf32>
    %88 = arith.mulf %86, %87 : vector<8x32xf32>
    %89 = arith.addf %85, %88 : vector<8x32xf32>
    %c0_32 = arith.constant 0 : index
    %c0_33 = arith.constant 0 : index
    %90 = vector.load %arg9[%c0_32, %c0_33] : memref<8x64xf32, #tpu.memory_space<vmem>>, vector<8x32xf32>
    tpu.vector_store %arg9[%c0_32, %c0_33], %67 {strides = array<i32>} : memref<8x64xf32, #tpu.memory_space<vmem>>, vector<8x32xf32>,
    %c0_34 = arith.constant 0 : index
    %c32 = arith.constant 32 : index
    %91 = vector.load %arg9[%c0_34, %c32] : memref<8x64xf32, #tpu.memory_space<vmem>>, vector<8x32xf32>
    tpu.vector_store %arg9[%c0_34, %c32], %89 {strides = array<i32>} : memref<8x64xf32, #tpu.memory_space<vmem>>, vector<8x32xf32>,
    %92 = arith.index_cast %c0_i32 : i32 to index
    %c0_35 = arith.constant 0 : index
    %c0_36 = arith.constant 0 : index
    %93 = vector.load %arg6[%92, %c0_35, %c0_36] : memref<8x8x64xf32, #tpu.memory_space<vmem>>, vector<1x8x32xf32>
    %94 = vector.shape_cast %93 : vector<1x8x32xf32> to vector<8x32xf32>
    %95 = vector.shape_cast %67 : vector<8x32xf32> to vector<1x8x32xf32>
    tpu.vector_store %arg6[%92, %c0_35, %c0_36], %95 {strides = array<i32>} : memref<8x8x64xf32, #tpu.memory_space<vmem>>, vector<1x8x32xf32>,
    %c7_i32_37 = arith.constant 7 : i32
    %96 = arith.subi %c7_i32_37, %c0_i32 : i32
    %97 = arith.index_cast %96 : i32 to index
    %c0_38 = arith.constant 0 : index
    %c32_39 = arith.constant 32 : index
    %98 = vector.load %arg6[%97, %c0_38, %c32_39] : memref<8x8x64xf32, #tpu.memory_space<vmem>>, vector<1x8x32xf32>
    %99 = vector.shape_cast %98 : vector<1x8x32xf32> to vector<8x32xf32>
    %100 = vector.shape_cast %89 : vector<8x32xf32> to vector<1x8x32xf32>
    tpu.vector_store %arg6[%97, %c0_38, %c32_39], %100 {strides = array<i32>} : memref<8x8x64xf32, #tpu.memory_space<vmem>>, vector<1x8x32xf32>,
    %c1_i32 = arith.constant 1 : i32
    %c0_40 = arith.constant 0 : index
    %c0_41 = arith.constant 0 : index
    %101 = vector.load %arg9[%c0_40, %c0_41] : memref<8x64xf32, #tpu.memory_space<vmem>>, vector<8x64xf32>
    %102 = arith.truncf %101 : vector<8x64xf32> to vector<8x64xbf16>
    %c0_42 = arith.constant 0 : index
    %c0_43 = arith.constant 0 : index
    %103 = vector.load %arg3[%c0_42, %c0_43] : memref<64x192xbf16, #tpu.memory_space<vmem>>, vector<64x192xbf16>
    %cst_44 = arith.constant dense<0.000000e+00> : vector<8x192xf32>
    %104 = tpu.matmul %102, %103, %cst_44 {dimension_numbers = #tpu.dot_dimension_numbers<[1], [0], [0], [1], [0, 0, 1, 1], [], []>} : vector<8x64xbf16>, vector<64x192xbf16>, vector<8x192xf32> -> vector<8x192xf32>
    %105 = arith.addf %104, %27 : vector<8x192xf32>
    %c8_i32_45 = arith.constant 8 : i32
    %106 = arith.muli %c1_i32, %c8_i32_45 : i32
    %107 = tpu.assume_multiple %106, 8 : i32
    %c7_i32_46 = arith.constant 7 : i32
    %108 = arith.subi %c7_i32_46, %c1_i32 : i32
    %c8_i32_47 = arith.constant 8 : i32
    %109 = arith.muli %108, %c8_i32_47 : i32
    %110 = tpu.assume_multiple %109, 8 : i32
    %c0_48 = arith.constant 0 : index
    %111 = arith.index_cast %107 : i32 to index
    %c0_49 = arith.constant 0 : index
    %112 = vector.load %arg8[%c0_48, %111, %c0_49] : memref<2x64x96xf32, #tpu.memory_space<vmem>>, vector<1x8x96xf32>
    %113 = vector.shape_cast %112 : vector<1x8x96xf32> to vector<8x96xf32>
    %c1_50 = arith.constant 1 : index
    %114 = arith.index_cast %110 : i32 to index
    %c0_51 = arith.constant 0 : index
    %115 = vector.load %arg8[%c1_50, %114, %c0_51] : memref<2x64x96xf32, #tpu.memory_space<vmem>>, vector<1x8x96xf32>
    %116 = vector.shape_cast %115 : vector<1x8x96xf32> to vector<8x96xf32>
    %117 = vector.extract_strided_slice %105 {offsets = [0, 0], sizes = [8, 96], strides = [1, 1]} : vector<8x192xf32> to vector<8x96xf32>
    %118 = vector.extract_strided_slice %105 {offsets = [0, 96], sizes = [8, 96], strides = [1, 1]} : vector<8x192xf32> to vector<8x96xf32>
    %119 = vector.extract_strided_slice %113 {offsets = [0, 0], sizes = [8, 64], strides = [1, 1]} : vector<8x96xf32> to vector<8x64xf32>
    %120 = vector.extract_strided_slice %117 {offsets = [0, 0], sizes = [8, 64], strides = [1, 1]} : vector<8x96xf32> to vector<8x64xf32>
    %121 = arith.addf %119, %120 : vector<8x64xf32>
    %122 = arith.negf %121 : vector<8x64xf32>
    %123 = math.exp %122 : vector<8x64xf32>
    %cst_52 = arith.constant 1.000000e+00 : f32
    %124 = vector.broadcast %cst_52 : f32 to vector<8x64xf32>
    %125 = arith.addf %124, %123 : vector<8x64xf32>
    %126 = arith.divf %124, %125 : vector<8x64xf32>
    %127 = vector.extract_strided_slice %113 {offsets = [0, 64], sizes = [8, 32], strides = [1, 1]} : vector<8x96xf32> to vector<8x32xf32>
    %128 = vector.extract_strided_slice %126 {offsets = [0, 0], sizes = [8, 32], strides = [1, 1]} : vector<8x64xf32> to vector<8x32xf32>
    %129 = vector.extract_strided_slice %117 {offsets = [0, 64], sizes = [8, 32], strides = [1, 1]} : vector<8x96xf32> to vector<8x32xf32>
    %130 = arith.mulf %128, %129 : vector<8x32xf32>
    %131 = arith.addf %127, %130 : vector<8x32xf32>
    %132 = math.tanh %131 : vector<8x32xf32>
    %133 = vector.extract_strided_slice %126 {offsets = [0, 32], sizes = [8, 32], strides = [1, 1]} : vector<8x64xf32> to vector<8x32xf32>
    %cst_53 = arith.constant 1.000000e+00 : f32
    %134 = vector.broadcast %cst_53 : f32 to vector<8x32xf32>
    %135 = arith.subf %134, %133 : vector<8x32xf32>
    %136 = arith.mulf %135, %132 : vector<8x32xf32>
    %137 = vector.extract_strided_slice %126 {offsets = [0, 32], sizes = [8, 32], strides = [1, 1]} : vector<8x64xf32> to vector<8x32xf32>
    %138 = vector.extract_strided_slice %101 {offsets = [0, 0], sizes = [8, 32], strides = [1, 1]} : vector<8x64xf32> to vector<8x32xf32>
    %139 = arith.mulf %137, %138 : vector<8x32xf32>
    %140 = arith.addf %136, %139 : vector<8x32xf32>
    %141 = vector.extract_strided_slice %116 {offsets = [0, 0], sizes = [8, 64], strides = [1, 1]} : vector<8x96xf32> to vector<8x64xf32>
    %142 = vector.extract_strided_slice %118 {offsets = [0, 0], sizes = [8, 64], strides = [1, 1]} : vector<8x96xf32> to vector<8x64xf32>
    %143 = arith.addf %141, %142 : vector<8x64xf32>
    %144 = arith.negf %143 : vector<8x64xf32>
    %145 = math.exp %144 : vector<8x64xf32>
    %cst_54 = arith.constant 1.000000e+00 : f32
    %146 = vector.broadcast %cst_54 : f32 to vector<8x64xf32>
    %147 = arith.addf %146, %145 : vector<8x64xf32>
    %148 = arith.divf %146, %147 : vector<8x64xf32>
    %149 = vector.extract_strided_slice %116 {offsets = [0, 64], sizes = [8, 32], strides = [1, 1]} : vector<8x96xf32> to vector<8x32xf32>
    %150 = vector.extract_strided_slice %148 {offsets = [0, 0], sizes = [8, 32], strides = [1, 1]} : vector<8x64xf32> to vector<8x32xf32>
    %151 = vector.extract_strided_slice %118 {offsets = [0, 64], sizes = [8, 32], strides = [1, 1]} : vector<8x96xf32> to vector<8x32xf32>
    %152 = arith.mulf %150, %151 : vector<8x32xf32>
    %153 = arith.addf %149, %152 : vector<8x32xf32>
    %154 = math.tanh %153 : vector<8x32xf32>
    %155 = vector.extract_strided_slice %148 {offsets = [0, 32], sizes = [8, 32], strides = [1, 1]} : vector<8x64xf32> to vector<8x32xf32>
    %cst_55 = arith.constant 1.000000e+00 : f32
    %156 = vector.broadcast %cst_55 : f32 to vector<8x32xf32>
    %157 = arith.subf %156, %155 : vector<8x32xf32>
    %158 = arith.mulf %157, %154 : vector<8x32xf32>
    %159 = vector.extract_strided_slice %148 {offsets = [0, 32], sizes = [8, 32], strides = [1, 1]} : vector<8x64xf32> to vector<8x32xf32>
    %160 = vector.extract_strided_slice %101 {offsets = [0, 32], sizes = [8, 32], strides = [1, 1]} : vector<8x64xf32> to vector<8x32xf32>
    %161 = arith.mulf %159, %160 : vector<8x32xf32>
    %162 = arith.addf %158, %161 : vector<8x32xf32>
    %c0_56 = arith.constant 0 : index
    %c0_57 = arith.constant 0 : index
    %163 = vector.load %arg9[%c0_56, %c0_57] : memref<8x64xf32, #tpu.memory_space<vmem>>, vector<8x32xf32>
    tpu.vector_store %arg9[%c0_56, %c0_57], %140 {strides = array<i32>} : memref<8x64xf32, #tpu.memory_space<vmem>>, vector<8x32xf32>,
    %c0_58 = arith.constant 0 : index
    %c32_59 = arith.constant 32 : index
    %164 = vector.load %arg9[%c0_58, %c32_59] : memref<8x64xf32, #tpu.memory_space<vmem>>, vector<8x32xf32>
    tpu.vector_store %arg9[%c0_58, %c32_59], %162 {strides = array<i32>} : memref<8x64xf32, #tpu.memory_space<vmem>>, vector<8x32xf32>,
    %165 = arith.index_cast %c1_i32 : i32 to index
    %c0_60 = arith.constant 0 : index
    %c0_61 = arith.constant 0 : index
    %166 = vector.load %arg6[%165, %c0_60, %c0_61] : memref<8x8x64xf32, #tpu.memory_space<vmem>>, vector<1x8x32xf32>
    %167 = vector.shape_cast %166 : vector<1x8x32xf32> to vector<8x32xf32>
    %168 = vector.shape_cast %140 : vector<8x32xf32> to vector<1x8x32xf32>
    tpu.vector_store %arg6[%165, %c0_60, %c0_61], %168 {strides = array<i32>} : memref<8x8x64xf32, #tpu.memory_space<vmem>>, vector<1x8x32xf32>,
    %c7_i32_62 = arith.constant 7 : i32
    %169 = arith.subi %c7_i32_62, %c1_i32 : i32
    %170 = arith.index_cast %169 : i32 to index
    %c0_63 = arith.constant 0 : index
    %c32_64 = arith.constant 32 : index
    %171 = vector.load %arg6[%170, %c0_63, %c32_64] : memref<8x8x64xf32, #tpu.memory_space<vmem>>, vector<1x8x32xf32>
    %172 = vector.shape_cast %171 : vector<1x8x32xf32> to vector<8x32xf32>
    %173 = vector.shape_cast %162 : vector<8x32xf32> to vector<1x8x32xf32>
    tpu.vector_store %arg6[%170, %c0_63, %c32_64], %173 {strides = array<i32>} : memref<8x8x64xf32, #tpu.memory_space<vmem>>, vector<1x8x32xf32>,
    %c2_i32 = arith.constant 2 : i32
    %c0_65 = arith.constant 0 : index
    %c0_66 = arith.constant 0 : index
    %174 = vector.load %arg9[%c0_65, %c0_66] : memref<8x64xf32, #tpu.memory_space<vmem>>, vector<8x64xf32>
    %175 = arith.truncf %174 : vector<8x64xf32> to vector<8x64xbf16>
    %c0_67 = arith.constant 0 : index
    %c0_68 = arith.constant 0 : index
    %176 = vector.load %arg3[%c0_67, %c0_68] : memref<64x192xbf16, #tpu.memory_space<vmem>>, vector<64x192xbf16>
    %cst_69 = arith.constant dense<0.000000e+00> : vector<8x192xf32>
    %177 = tpu.matmul %175, %176, %cst_69 {dimension_numbers = #tpu.dot_dimension_numbers<[1], [0], [0], [1], [0, 0, 1, 1], [], []>} : vector<8x64xbf16>, vector<64x192xbf16>, vector<8x192xf32> -> vector<8x192xf32>
    %178 = arith.addf %177, %27 : vector<8x192xf32>
    %c8_i32_70 = arith.constant 8 : i32
    %179 = arith.muli %c2_i32, %c8_i32_70 : i32
    %180 = tpu.assume_multiple %179, 8 : i32
    %c7_i32_71 = arith.constant 7 : i32
    %181 = arith.subi %c7_i32_71, %c2_i32 : i32
    %c8_i32_72 = arith.constant 8 : i32
    %182 = arith.muli %181, %c8_i32_72 : i32
    %183 = tpu.assume_multiple %182, 8 : i32
    %c0_73 = arith.constant 0 : index
    %184 = arith.index_cast %180 : i32 to index
    %c0_74 = arith.constant 0 : index
    %185 = vector.load %arg8[%c0_73, %184, %c0_74] : memref<2x64x96xf32, #tpu.memory_space<vmem>>, vector<1x8x96xf32>
    %186 = vector.shape_cast %185 : vector<1x8x96xf32> to vector<8x96xf32>
    %c1_75 = arith.constant 1 : index
    %187 = arith.index_cast %183 : i32 to index
    %c0_76 = arith.constant 0 : index
    %188 = vector.load %arg8[%c1_75, %187, %c0_76] : memref<2x64x96xf32, #tpu.memory_space<vmem>>, vector<1x8x96xf32>
    %189 = vector.shape_cast %188 : vector<1x8x96xf32> to vector<8x96xf32>
    %190 = vector.extract_strided_slice %178 {offsets = [0, 0], sizes = [8, 96], strides = [1, 1]} : vector<8x192xf32> to vector<8x96xf32>
    %191 = vector.extract_strided_slice %178 {offsets = [0, 96], sizes = [8, 96], strides = [1, 1]} : vector<8x192xf32> to vector<8x96xf32>
    %192 = vector.extract_strided_slice %186 {offsets = [0, 0], sizes = [8, 64], strides = [1, 1]} : vector<8x96xf32> to vector<8x64xf32>
    %193 = vector.extract_strided_slice %190 {offsets = [0, 0], sizes = [8, 64], strides = [1, 1]} : vector<8x96xf32> to vector<8x64xf32>
    %194 = arith.addf %192, %193 : vector<8x64xf32>
    %195 = arith.negf %194 : vector<8x64xf32>
    %196 = math.exp %195 : vector<8x64xf32>
    %cst_77 = arith.constant 1.000000e+00 : f32
    %197 = vector.broadcast %cst_77 : f32 to vector<8x64xf32>
    %198 = arith.addf %197, %196 : vector<8x64xf32>
    %199 = arith.divf %197, %198 : vector<8x64xf32>
    %200 = vector.extract_strided_slice %186 {offsets = [0, 64], sizes = [8, 32], strides = [1, 1]} : vector<8x96xf32> to vector<8x32xf32>
    %201 = vector.extract_strided_slice %199 {offsets = [0, 0], sizes = [8, 32], strides = [1, 1]} : vector<8x64xf32> to vector<8x32xf32>
    %202 = vector.extract_strided_slice %190 {offsets = [0, 64], sizes = [8, 32], strides = [1, 1]} : vector<8x96xf32> to vector<8x32xf32>
    %203 = arith.mulf %201, %202 : vector<8x32xf32>
    %204 = arith.addf %200, %203 : vector<8x32xf32>
    %205 = math.tanh %204 : vector<8x32xf32>
    %206 = vector.extract_strided_slice %199 {offsets = [0, 32], sizes = [8, 32], strides = [1, 1]} : vector<8x64xf32> to vector<8x32xf32>
    %cst_78 = arith.constant 1.000000e+00 : f32
    %207 = vector.broadcast %cst_78 : f32 to vector<8x32xf32>
    %208 = arith.subf %207, %206 : vector<8x32xf32>
    %209 = arith.mulf %208, %205 : vector<8x32xf32>
    %210 = vector.extract_strided_slice %199 {offsets = [0, 32], sizes = [8, 32], strides = [1, 1]} : vector<8x64xf32> to vector<8x32xf32>
    %211 = vector.extract_strided_slice %174 {offsets = [0, 0], sizes = [8, 32], strides = [1, 1]} : vector<8x64xf32> to vector<8x32xf32>
    %212 = arith.mulf %210, %211 : vector<8x32xf32>
    %213 = arith.addf %209, %212 : vector<8x32xf32>
    %214 = vector.extract_strided_slice %189 {offsets = [0, 0], sizes = [8, 64], strides = [1, 1]} : vector<8x96xf32> to vector<8x64xf32>
    %215 = vector.extract_strided_slice %191 {offsets = [0, 0], sizes = [8, 64], strides = [1, 1]} : vector<8x96xf32> to vector<8x64xf32>
    %216 = arith.addf %214, %215 : vector<8x64xf32>
    %217 = arith.negf %216 : vector<8x64xf32>
    %218 = math.exp %217 : vector<8x64xf32>
    %cst_79 = arith.constant 1.000000e+00 : f32
    %219 = vector.broadcast %cst_79 : f32 to vector<8x64xf32>
    %220 = arith.addf %219, %218 : vector<8x64xf32>
    %221 = arith.divf %219, %220 : vector<8x64xf32>
    %222 = vector.extract_strided_slice %189 {offsets = [0, 64], sizes = [8, 32], strides = [1, 1]} : vector<8x96xf32> to vector<8x32xf32>
    %223 = vector.extract_strided_slice %221 {offsets = [0, 0], sizes = [8, 32], strides = [1, 1]} : vector<8x64xf32> to vector<8x32xf32>
    %224 = vector.extract_strided_slice %191 {offsets = [0, 64], sizes = [8, 32], strides = [1, 1]} : vector<8x96xf32> to vector<8x32xf32>
    %225 = arith.mulf %223, %224 : vector<8x32xf32>
    %226 = arith.addf %222, %225 : vector<8x32xf32>
    %227 = math.tanh %226 : vector<8x32xf32>
    %228 = vector.extract_strided_slice %221 {offsets = [0, 32], sizes = [8, 32], strides = [1, 1]} : vector<8x64xf32> to vector<8x32xf32>
    %cst_80 = arith.constant 1.000000e+00 : f32
    %229 = vector.broadcast %cst_80 : f32 to vector<8x32xf32>
    %230 = arith.subf %229, %228 : vector<8x32xf32>
    %231 = arith.mulf %230, %227 : vector<8x32xf32>
    %232 = vector.extract_strided_slice %221 {offsets = [0, 32], sizes = [8, 32], strides = [1, 1]} : vector<8x64xf32> to vector<8x32xf32>
    %233 = vector.extract_strided_slice %174 {offsets = [0, 32], sizes = [8, 32], strides = [1, 1]} : vector<8x64xf32> to vector<8x32xf32>
    %234 = arith.mulf %232, %233 : vector<8x32xf32>
    %235 = arith.addf %231, %234 : vector<8x32xf32>
    %c0_81 = arith.constant 0 : index
    %c0_82 = arith.constant 0 : index
    %236 = vector.load %arg9[%c0_81, %c0_82] : memref<8x64xf32, #tpu.memory_space<vmem>>, vector<8x32xf32>
    tpu.vector_store %arg9[%c0_81, %c0_82], %213 {strides = array<i32>} : memref<8x64xf32, #tpu.memory_space<vmem>>, vector<8x32xf32>,
    %c0_83 = arith.constant 0 : index
    %c32_84 = arith.constant 32 : index
    %237 = vector.load %arg9[%c0_83, %c32_84] : memref<8x64xf32, #tpu.memory_space<vmem>>, vector<8x32xf32>
    tpu.vector_store %arg9[%c0_83, %c32_84], %235 {strides = array<i32>} : memref<8x64xf32, #tpu.memory_space<vmem>>, vector<8x32xf32>,
    %238 = arith.index_cast %c2_i32 : i32 to index
    %c0_85 = arith.constant 0 : index
    %c0_86 = arith.constant 0 : index
    %239 = vector.load %arg6[%238, %c0_85, %c0_86] : memref<8x8x64xf32, #tpu.memory_space<vmem>>, vector<1x8x32xf32>
    %240 = vector.shape_cast %239 : vector<1x8x32xf32> to vector<8x32xf32>
    %241 = vector.shape_cast %213 : vector<8x32xf32> to vector<1x8x32xf32>
    tpu.vector_store %arg6[%238, %c0_85, %c0_86], %241 {strides = array<i32>} : memref<8x8x64xf32, #tpu.memory_space<vmem>>, vector<1x8x32xf32>,
    %c7_i32_87 = arith.constant 7 : i32
    %242 = arith.subi %c7_i32_87, %c2_i32 : i32
    %243 = arith.index_cast %242 : i32 to index
    %c0_88 = arith.constant 0 : index
    %c32_89 = arith.constant 32 : index
    %244 = vector.load %arg6[%243, %c0_88, %c32_89] : memref<8x8x64xf32, #tpu.memory_space<vmem>>, vector<1x8x32xf32>
    %245 = vector.shape_cast %244 : vector<1x8x32xf32> to vector<8x32xf32>
    %246 = vector.shape_cast %235 : vector<8x32xf32> to vector<1x8x32xf32>
    tpu.vector_store %arg6[%243, %c0_88, %c32_89], %246 {strides = array<i32>} : memref<8x8x64xf32, #tpu.memory_space<vmem>>, vector<1x8x32xf32>,
    %c3_i32 = arith.constant 3 : i32
    %c0_90 = arith.constant 0 : index
    %c0_91 = arith.constant 0 : index
    %247 = vector.load %arg9[%c0_90, %c0_91] : memref<8x64xf32, #tpu.memory_space<vmem>>, vector<8x64xf32>
    %248 = arith.truncf %247 : vector<8x64xf32> to vector<8x64xbf16>
    %c0_92 = arith.constant 0 : index
    %c0_93 = arith.constant 0 : index
    %249 = vector.load %arg3[%c0_92, %c0_93] : memref<64x192xbf16, #tpu.memory_space<vmem>>, vector<64x192xbf16>
    %cst_94 = arith.constant dense<0.000000e+00> : vector<8x192xf32>
    %250 = tpu.matmul %248, %249, %cst_94 {dimension_numbers = #tpu.dot_dimension_numbers<[1], [0], [0], [1], [0, 0, 1, 1], [], []>} : vector<8x64xbf16>, vector<64x192xbf16>, vector<8x192xf32> -> vector<8x192xf32>
    %251 = arith.addf %250, %27 : vector<8x192xf32>
    %c8_i32_95 = arith.constant 8 : i32
    %252 = arith.muli %c3_i32, %c8_i32_95 : i32
    %253 = tpu.assume_multiple %252, 8 : i32
    %c7_i32_96 = arith.constant 7 : i32
    %254 = arith.subi %c7_i32_96, %c3_i32 : i32
    %c8_i32_97 = arith.constant 8 : i32
    %255 = arith.muli %254, %c8_i32_97 : i32
    %256 = tpu.assume_multiple %255, 8 : i32
    %c0_98 = arith.constant 0 : index
    %257 = arith.index_cast %253 : i32 to index
    %c0_99 = arith.constant 0 : index
    %258 = vector.load %arg8[%c0_98, %257, %c0_99] : memref<2x64x96xf32, #tpu.memory_space<vmem>>, vector<1x8x96xf32>
    %259 = vector.shape_cast %258 : vector<1x8x96xf32> to vector<8x96xf32>
    %c1_100 = arith.constant 1 : index
    %260 = arith.index_cast %256 : i32 to index
    %c0_101 = arith.constant 0 : index
    %261 = vector.load %arg8[%c1_100, %260, %c0_101] : memref<2x64x96xf32, #tpu.memory_space<vmem>>, vector<1x8x96xf32>
    %262 = vector.shape_cast %261 : vector<1x8x96xf32> to vector<8x96xf32>
    %263 = vector.extract_strided_slice %251 {offsets = [0, 0], sizes = [8, 96], strides = [1, 1]} : vector<8x192xf32> to vector<8x96xf32>
    %264 = vector.extract_strided_slice %251 {offsets = [0, 96], sizes = [8, 96], strides = [1, 1]} : vector<8x192xf32> to vector<8x96xf32>
    %265 = vector.extract_strided_slice %259 {offsets = [0, 0], sizes = [8, 64], strides = [1, 1]} : vector<8x96xf32> to vector<8x64xf32>
    %266 = vector.extract_strided_slice %263 {offsets = [0, 0], sizes = [8, 64], strides = [1, 1]} : vector<8x96xf32> to vector<8x64xf32>
    %267 = arith.addf %265, %266 : vector<8x64xf32>
    %268 = arith.negf %267 : vector<8x64xf32>
    %269 = math.exp %268 : vector<8x64xf32>
    %cst_102 = arith.constant 1.000000e+00 : f32
    %270 = vector.broadcast %cst_102 : f32 to vector<8x64xf32>
    %271 = arith.addf %270, %269 : vector<8x64xf32>
    %272 = arith.divf %270, %271 : vector<8x64xf32>
    %273 = vector.extract_strided_slice %259 {offsets = [0, 64], sizes = [8, 32], strides = [1, 1]} : vector<8x96xf32> to vector<8x32xf32>
    %274 = vector.extract_strided_slice %272 {offsets = [0, 0], sizes = [8, 32], strides = [1, 1]} : vector<8x64xf32> to vector<8x32xf32>
    %275 = vector.extract_strided_slice %263 {offsets = [0, 64], sizes = [8, 32], strides = [1, 1]} : vector<8x96xf32> to vector<8x32xf32>
    %276 = arith.mulf %274, %275 : vector<8x32xf32>
    %277 = arith.addf %273, %276 : vector<8x32xf32>
    %278 = math.tanh %277 : vector<8x32xf32>
    %279 = vector.extract_strided_slice %272 {offsets = [0, 32], sizes = [8, 32], strides = [1, 1]} : vector<8x64xf32> to vector<8x32xf32>
    %cst_103 = arith.constant 1.000000e+00 : f32
    %280 = vector.broadcast %cst_103 : f32 to vector<8x32xf32>
    %281 = arith.subf %280, %279 : vector<8x32xf32>
    %282 = arith.mulf %281, %278 : vector<8x32xf32>
    %283 = vector.extract_strided_slice %272 {offsets = [0, 32], sizes = [8, 32], strides = [1, 1]} : vector<8x64xf32> to vector<8x32xf32>
    %284 = vector.extract_strided_slice %247 {offsets = [0, 0], sizes = [8, 32], strides = [1, 1]} : vector<8x64xf32> to vector<8x32xf32>
    %285 = arith.mulf %283, %284 : vector<8x32xf32>
    %286 = arith.addf %282, %285 : vector<8x32xf32>
    %287 = vector.extract_strided_slice %262 {offsets = [0, 0], sizes = [8, 64], strides = [1, 1]} : vector<8x96xf32> to vector<8x64xf32>
    %288 = vector.extract_strided_slice %264 {offsets = [0, 0], sizes = [8, 64], strides = [1, 1]} : vector<8x96xf32> to vector<8x64xf32>
    %289 = arith.addf %287, %288 : vector<8x64xf32>
    %290 = arith.negf %289 : vector<8x64xf32>
    %291 = math.exp %290 : vector<8x64xf32>
    %cst_104 = arith.constant 1.000000e+00 : f32
    %292 = vector.broadcast %cst_104 : f32 to vector<8x64xf32>
    %293 = arith.addf %292, %291 : vector<8x64xf32>
    %294 = arith.divf %292, %293 : vector<8x64xf32>
    %295 = vector.extract_strided_slice %262 {offsets = [0, 64], sizes = [8, 32], strides = [1, 1]} : vector<8x96xf32> to vector<8x32xf32>
    %296 = vector.extract_strided_slice %294 {offsets = [0, 0], sizes = [8, 32], strides = [1, 1]} : vector<8x64xf32> to vector<8x32xf32>
    %297 = vector.extract_strided_slice %264 {offsets = [0, 64], sizes = [8, 32], strides = [1, 1]} : vector<8x96xf32> to vector<8x32xf32>
    %298 = arith.mulf %296, %297 : vector<8x32xf32>
    %299 = arith.addf %295, %298 : vector<8x32xf32>
    %300 = math.tanh %299 : vector<8x32xf32>
    %301 = vector.extract_strided_slice %294 {offsets = [0, 32], sizes = [8, 32], strides = [1, 1]} : vector<8x64xf32> to vector<8x32xf32>
    %cst_105 = arith.constant 1.000000e+00 : f32
    %302 = vector.broadcast %cst_105 : f32 to vector<8x32xf32>
    %303 = arith.subf %302, %301 : vector<8x32xf32>
    %304 = arith.mulf %303, %300 : vector<8x32xf32>
    %305 = vector.extract_strided_slice %294 {offsets = [0, 32], sizes = [8, 32], strides = [1, 1]} : vector<8x64xf32> to vector<8x32xf32>
    %306 = vector.extract_strided_slice %247 {offsets = [0, 32], sizes = [8, 32], strides = [1, 1]} : vector<8x64xf32> to vector<8x32xf32>
    %307 = arith.mulf %305, %306 : vector<8x32xf32>
    %308 = arith.addf %304, %307 : vector<8x32xf32>
    %c0_106 = arith.constant 0 : index
    %c0_107 = arith.constant 0 : index
    %309 = vector.load %arg9[%c0_106, %c0_107] : memref<8x64xf32, #tpu.memory_space<vmem>>, vector<8x32xf32>
    tpu.vector_store %arg9[%c0_106, %c0_107], %286 {strides = array<i32>} : memref<8x64xf32, #tpu.memory_space<vmem>>, vector<8x32xf32>,
    %c0_108 = arith.constant 0 : index
    %c32_109 = arith.constant 32 : index
    %310 = vector.load %arg9[%c0_108, %c32_109] : memref<8x64xf32, #tpu.memory_space<vmem>>, vector<8x32xf32>
    tpu.vector_store %arg9[%c0_108, %c32_109], %308 {strides = array<i32>} : memref<8x64xf32, #tpu.memory_space<vmem>>, vector<8x32xf32>,
    %311 = arith.index_cast %c3_i32 : i32 to index
    %c0_110 = arith.constant 0 : index
    %c0_111 = arith.constant 0 : index
    %312 = vector.load %arg6[%311, %c0_110, %c0_111] : memref<8x8x64xf32, #tpu.memory_space<vmem>>, vector<1x8x32xf32>
    %313 = vector.shape_cast %312 : vector<1x8x32xf32> to vector<8x32xf32>
    %314 = vector.shape_cast %286 : vector<8x32xf32> to vector<1x8x32xf32>
    tpu.vector_store %arg6[%311, %c0_110, %c0_111], %314 {strides = array<i32>} : memref<8x8x64xf32, #tpu.memory_space<vmem>>, vector<1x8x32xf32>,
    %c7_i32_112 = arith.constant 7 : i32
    %315 = arith.subi %c7_i32_112, %c3_i32 : i32
    %316 = arith.index_cast %315 : i32 to index
    %c0_113 = arith.constant 0 : index
    %c32_114 = arith.constant 32 : index
    %317 = vector.load %arg6[%316, %c0_113, %c32_114] : memref<8x8x64xf32, #tpu.memory_space<vmem>>, vector<1x8x32xf32>
    %318 = vector.shape_cast %317 : vector<1x8x32xf32> to vector<8x32xf32>
    %319 = vector.shape_cast %308 : vector<8x32xf32> to vector<1x8x32xf32>
    tpu.vector_store %arg6[%316, %c0_113, %c32_114], %319 {strides = array<i32>} : memref<8x8x64xf32, #tpu.memory_space<vmem>>, vector<1x8x32xf32>,
    %c4_i32 = arith.constant 4 : i32
    %c0_115 = arith.constant 0 : index
    %c0_116 = arith.constant 0 : index
    %320 = vector.load %arg9[%c0_115, %c0_116] : memref<8x64xf32, #tpu.memory_space<vmem>>, vector<8x64xf32>
    %321 = arith.truncf %320 : vector<8x64xf32> to vector<8x64xbf16>
    %c0_117 = arith.constant 0 : index
    %c0_118 = arith.constant 0 : index
    %322 = vector.load %arg3[%c0_117, %c0_118] : memref<64x192xbf16, #tpu.memory_space<vmem>>, vector<64x192xbf16>
    %cst_119 = arith.constant dense<0.000000e+00> : vector<8x192xf32>
    %323 = tpu.matmul %321, %322, %cst_119 {dimension_numbers = #tpu.dot_dimension_numbers<[1], [0], [0], [1], [0, 0, 1, 1], [], []>} : vector<8x64xbf16>, vector<64x192xbf16>, vector<8x192xf32> -> vector<8x192xf32>
    %324 = arith.addf %323, %27 : vector<8x192xf32>
    %c8_i32_120 = arith.constant 8 : i32
    %325 = arith.muli %c4_i32, %c8_i32_120 : i32
    %326 = tpu.assume_multiple %325, 8 : i32
    %c7_i32_121 = arith.constant 7 : i32
    %327 = arith.subi %c7_i32_121, %c4_i32 : i32
    %c8_i32_122 = arith.constant 8 : i32
    %328 = arith.muli %327, %c8_i32_122 : i32
    %329 = tpu.assume_multiple %328, 8 : i32
    %c0_123 = arith.constant 0 : index
    %330 = arith.index_cast %326 : i32 to index
    %c0_124 = arith.constant 0 : index
    %331 = vector.load %arg8[%c0_123, %330, %c0_124] : memref<2x64x96xf32, #tpu.memory_space<vmem>>, vector<1x8x96xf32>
    %332 = vector.shape_cast %331 : vector<1x8x96xf32> to vector<8x96xf32>
    %c1_125 = arith.constant 1 : index
    %333 = arith.index_cast %329 : i32 to index
    %c0_126 = arith.constant 0 : index
    %334 = vector.load %arg8[%c1_125, %333, %c0_126] : memref<2x64x96xf32, #tpu.memory_space<vmem>>, vector<1x8x96xf32>
    %335 = vector.shape_cast %334 : vector<1x8x96xf32> to vector<8x96xf32>
    %336 = vector.extract_strided_slice %324 {offsets = [0, 0], sizes = [8, 96], strides = [1, 1]} : vector<8x192xf32> to vector<8x96xf32>
    %337 = vector.extract_strided_slice %324 {offsets = [0, 96], sizes = [8, 96], strides = [1, 1]} : vector<8x192xf32> to vector<8x96xf32>
    %338 = vector.extract_strided_slice %332 {offsets = [0, 0], sizes = [8, 64], strides = [1, 1]} : vector<8x96xf32> to vector<8x64xf32>
    %339 = vector.extract_strided_slice %336 {offsets = [0, 0], sizes = [8, 64], strides = [1, 1]} : vector<8x96xf32> to vector<8x64xf32>
    %340 = arith.addf %338, %339 : vector<8x64xf32>
    %341 = arith.negf %340 : vector<8x64xf32>
    %342 = math.exp %341 : vector<8x64xf32>
    %cst_127 = arith.constant 1.000000e+00 : f32
    %343 = vector.broadcast %cst_127 : f32 to vector<8x64xf32>
    %344 = arith.addf %343, %342 : vector<8x64xf32>
    %345 = arith.divf %343, %344 : vector<8x64xf32>
    %346 = vector.extract_strided_slice %332 {offsets = [0, 64], sizes = [8, 32], strides = [1, 1]} : vector<8x96xf32> to vector<8x32xf32>
    %347 = vector.extract_strided_slice %345 {offsets = [0, 0], sizes = [8, 32], strides = [1, 1]} : vector<8x64xf32> to vector<8x32xf32>
    %348 = vector.extract_strided_slice %336 {offsets = [0, 64], sizes = [8, 32], strides = [1, 1]} : vector<8x96xf32> to vector<8x32xf32>
    %349 = arith.mulf %347, %348 : vector<8x32xf32>
    %350 = arith.addf %346, %349 : vector<8x32xf32>
    %351 = math.tanh %350 : vector<8x32xf32>
    %352 = vector.extract_strided_slice %345 {offsets = [0, 32], sizes = [8, 32], strides = [1, 1]} : vector<8x64xf32> to vector<8x32xf32>
    %cst_128 = arith.constant 1.000000e+00 : f32
    %353 = vector.broadcast %cst_128 : f32 to vector<8x32xf32>
    %354 = arith.subf %353, %352 : vector<8x32xf32>
    %355 = arith.mulf %354, %351 : vector<8x32xf32>
    %356 = vector.extract_strided_slice %345 {offsets = [0, 32], sizes = [8, 32], strides = [1, 1]} : vector<8x64xf32> to vector<8x32xf32>
    %357 = vector.extract_strided_slice %320 {offsets = [0, 0], sizes = [8, 32], strides = [1, 1]} : vector<8x64xf32> to vector<8x32xf32>
    %358 = arith.mulf %356, %357 : vector<8x32xf32>
    %359 = arith.addf %355, %358 : vector<8x32xf32>
    %360 = vector.extract_strided_slice %335 {offsets = [0, 0], sizes = [8, 64], strides = [1, 1]} : vector<8x96xf32> to vector<8x64xf32>
    %361 = vector.extract_strided_slice %337 {offsets = [0, 0], sizes = [8, 64], strides = [1, 1]} : vector<8x96xf32> to vector<8x64xf32>
    %362 = arith.addf %360, %361 : vector<8x64xf32>
    %363 = arith.negf %362 : vector<8x64xf32>
    %364 = math.exp %363 : vector<8x64xf32>
    %cst_129 = arith.constant 1.000000e+00 : f32
    %365 = vector.broadcast %cst_129 : f32 to vector<8x64xf32>
    %366 = arith.addf %365, %364 : vector<8x64xf32>
    %367 = arith.divf %365, %366 : vector<8x64xf32>
    %368 = vector.extract_strided_slice %335 {offsets = [0, 64], sizes = [8, 32], strides = [1, 1]} : vector<8x96xf32> to vector<8x32xf32>
    %369 = vector.extract_strided_slice %367 {offsets = [0, 0], sizes = [8, 32], strides = [1, 1]} : vector<8x64xf32> to vector<8x32xf32>
    %370 = vector.extract_strided_slice %337 {offsets = [0, 64], sizes = [8, 32], strides = [1, 1]} : vector<8x96xf32> to vector<8x32xf32>
    %371 = arith.mulf %369, %370 : vector<8x32xf32>
    %372 = arith.addf %368, %371 : vector<8x32xf32>
    %373 = math.tanh %372 : vector<8x32xf32>
    %374 = vector.extract_strided_slice %367 {offsets = [0, 32], sizes = [8, 32], strides = [1, 1]} : vector<8x64xf32> to vector<8x32xf32>
    %cst_130 = arith.constant 1.000000e+00 : f32
    %375 = vector.broadcast %cst_130 : f32 to vector<8x32xf32>
    %376 = arith.subf %375, %374 : vector<8x32xf32>
    %377 = arith.mulf %376, %373 : vector<8x32xf32>
    %378 = vector.extract_strided_slice %367 {offsets = [0, 32], sizes = [8, 32], strides = [1, 1]} : vector<8x64xf32> to vector<8x32xf32>
    %379 = vector.extract_strided_slice %320 {offsets = [0, 32], sizes = [8, 32], strides = [1, 1]} : vector<8x64xf32> to vector<8x32xf32>
    %380 = arith.mulf %378, %379 : vector<8x32xf32>
    %381 = arith.addf %377, %380 : vector<8x32xf32>
    %c0_131 = arith.constant 0 : index
    %c0_132 = arith.constant 0 : index
    %382 = vector.load %arg9[%c0_131, %c0_132] : memref<8x64xf32, #tpu.memory_space<vmem>>, vector<8x32xf32>
    tpu.vector_store %arg9[%c0_131, %c0_132], %359 {strides = array<i32>} : memref<8x64xf32, #tpu.memory_space<vmem>>, vector<8x32xf32>,
    %c0_133 = arith.constant 0 : index
    %c32_134 = arith.constant 32 : index
    %383 = vector.load %arg9[%c0_133, %c32_134] : memref<8x64xf32, #tpu.memory_space<vmem>>, vector<8x32xf32>
    tpu.vector_store %arg9[%c0_133, %c32_134], %381 {strides = array<i32>} : memref<8x64xf32, #tpu.memory_space<vmem>>, vector<8x32xf32>,
    %384 = arith.index_cast %c4_i32 : i32 to index
    %c0_135 = arith.constant 0 : index
    %c0_136 = arith.constant 0 : index
    %385 = vector.load %arg6[%384, %c0_135, %c0_136] : memref<8x8x64xf32, #tpu.memory_space<vmem>>, vector<1x8x32xf32>
    %386 = vector.shape_cast %385 : vector<1x8x32xf32> to vector<8x32xf32>
    %387 = vector.shape_cast %359 : vector<8x32xf32> to vector<1x8x32xf32>
    tpu.vector_store %arg6[%384, %c0_135, %c0_136], %387 {strides = array<i32>} : memref<8x8x64xf32, #tpu.memory_space<vmem>>, vector<1x8x32xf32>,
    %c7_i32_137 = arith.constant 7 : i32
    %388 = arith.subi %c7_i32_137, %c4_i32 : i32
    %389 = arith.index_cast %388 : i32 to index
    %c0_138 = arith.constant 0 : index
    %c32_139 = arith.constant 32 : index
    %390 = vector.load %arg6[%389, %c0_138, %c32_139] : memref<8x8x64xf32, #tpu.memory_space<vmem>>, vector<1x8x32xf32>
    %391 = vector.shape_cast %390 : vector<1x8x32xf32> to vector<8x32xf32>
    %392 = vector.shape_cast %381 : vector<8x32xf32> to vector<1x8x32xf32>
    tpu.vector_store %arg6[%389, %c0_138, %c32_139], %392 {strides = array<i32>} : memref<8x8x64xf32, #tpu.memory_space<vmem>>, vector<1x8x32xf32>,
    %c5_i32 = arith.constant 5 : i32
    %c0_140 = arith.constant 0 : index
    %c0_141 = arith.constant 0 : index
    %393 = vector.load %arg9[%c0_140, %c0_141] : memref<8x64xf32, #tpu.memory_space<vmem>>, vector<8x64xf32>
    %394 = arith.truncf %393 : vector<8x64xf32> to vector<8x64xbf16>
    %c0_142 = arith.constant 0 : index
    %c0_143 = arith.constant 0 : index
    %395 = vector.load %arg3[%c0_142, %c0_143] : memref<64x192xbf16, #tpu.memory_space<vmem>>, vector<64x192xbf16>
    %cst_144 = arith.constant dense<0.000000e+00> : vector<8x192xf32>
    %396 = tpu.matmul %394, %395, %cst_144 {dimension_numbers = #tpu.dot_dimension_numbers<[1], [0], [0], [1], [0, 0, 1, 1], [], []>} : vector<8x64xbf16>, vector<64x192xbf16>, vector<8x192xf32> -> vector<8x192xf32>
    %397 = arith.addf %396, %27 : vector<8x192xf32>
    %c8_i32_145 = arith.constant 8 : i32
    %398 = arith.muli %c5_i32, %c8_i32_145 : i32
    %399 = tpu.assume_multiple %398, 8 : i32
    %c7_i32_146 = arith.constant 7 : i32
    %400 = arith.subi %c7_i32_146, %c5_i32 : i32
    %c8_i32_147 = arith.constant 8 : i32
    %401 = arith.muli %400, %c8_i32_147 : i32
    %402 = tpu.assume_multiple %401, 8 : i32
    %c0_148 = arith.constant 0 : index
    %403 = arith.index_cast %399 : i32 to index
    %c0_149 = arith.constant 0 : index
    %404 = vector.load %arg8[%c0_148, %403, %c0_149] : memref<2x64x96xf32, #tpu.memory_space<vmem>>, vector<1x8x96xf32>
    %405 = vector.shape_cast %404 : vector<1x8x96xf32> to vector<8x96xf32>
    %c1_150 = arith.constant 1 : index
    %406 = arith.index_cast %402 : i32 to index
    %c0_151 = arith.constant 0 : index
    %407 = vector.load %arg8[%c1_150, %406, %c0_151] : memref<2x64x96xf32, #tpu.memory_space<vmem>>, vector<1x8x96xf32>
    %408 = vector.shape_cast %407 : vector<1x8x96xf32> to vector<8x96xf32>
    %409 = vector.extract_strided_slice %397 {offsets = [0, 0], sizes = [8, 96], strides = [1, 1]} : vector<8x192xf32> to vector<8x96xf32>
    %410 = vector.extract_strided_slice %397 {offsets = [0, 96], sizes = [8, 96], strides = [1, 1]} : vector<8x192xf32> to vector<8x96xf32>
    %411 = vector.extract_strided_slice %405 {offsets = [0, 0], sizes = [8, 64], strides = [1, 1]} : vector<8x96xf32> to vector<8x64xf32>
    %412 = vector.extract_strided_slice %409 {offsets = [0, 0], sizes = [8, 64], strides = [1, 1]} : vector<8x96xf32> to vector<8x64xf32>
    %413 = arith.addf %411, %412 : vector<8x64xf32>
    %414 = arith.negf %413 : vector<8x64xf32>
    %415 = math.exp %414 : vector<8x64xf32>
    %cst_152 = arith.constant 1.000000e+00 : f32
    %416 = vector.broadcast %cst_152 : f32 to vector<8x64xf32>
    %417 = arith.addf %416, %415 : vector<8x64xf32>
    %418 = arith.divf %416, %417 : vector<8x64xf32>
    %419 = vector.extract_strided_slice %405 {offsets = [0, 64], sizes = [8, 32], strides = [1, 1]} : vector<8x96xf32> to vector<8x32xf32>
    %420 = vector.extract_strided_slice %418 {offsets = [0, 0], sizes = [8, 32], strides = [1, 1]} : vector<8x64xf32> to vector<8x32xf32>
    %421 = vector.extract_strided_slice %409 {offsets = [0, 64], sizes = [8, 32], strides = [1, 1]} : vector<8x96xf32> to vector<8x32xf32>
    %422 = arith.mulf %420, %421 : vector<8x32xf32>
    %423 = arith.addf %419, %422 : vector<8x32xf32>
    %424 = math.tanh %423 : vector<8x32xf32>
    %425 = vector.extract_strided_slice %418 {offsets = [0, 32], sizes = [8, 32], strides = [1, 1]} : vector<8x64xf32> to vector<8x32xf32>
    %cst_153 = arith.constant 1.000000e+00 : f32
    %426 = vector.broadcast %cst_153 : f32 to vector<8x32xf32>
    %427 = arith.subf %426, %425 : vector<8x32xf32>
    %428 = arith.mulf %427, %424 : vector<8x32xf32>
    %429 = vector.extract_strided_slice %418 {offsets = [0, 32], sizes = [8, 32], strides = [1, 1]} : vector<8x64xf32> to vector<8x32xf32>
    %430 = vector.extract_strided_slice %393 {offsets = [0, 0], sizes = [8, 32], strides = [1, 1]} : vector<8x64xf32> to vector<8x32xf32>
    %431 = arith.mulf %429, %430 : vector<8x32xf32>
    %432 = arith.addf %428, %431 : vector<8x32xf32>
    %433 = vector.extract_strided_slice %408 {offsets = [0, 0], sizes = [8, 64], strides = [1, 1]} : vector<8x96xf32> to vector<8x64xf32>
    %434 = vector.extract_strided_slice %410 {offsets = [0, 0], sizes = [8, 64], strides = [1, 1]} : vector<8x96xf32> to vector<8x64xf32>
    %435 = arith.addf %433, %434 : vector<8x64xf32>
    %436 = arith.negf %435 : vector<8x64xf32>
    %437 = math.exp %436 : vector<8x64xf32>
    %cst_154 = arith.constant 1.000000e+00 : f32
    %438 = vector.broadcast %cst_154 : f32 to vector<8x64xf32>
    %439 = arith.addf %438, %437 : vector<8x64xf32>
    %440 = arith.divf %438, %439 : vector<8x64xf32>
    %441 = vector.extract_strided_slice %408 {offsets = [0, 64], sizes = [8, 32], strides = [1, 1]} : vector<8x96xf32> to vector<8x32xf32>
    %442 = vector.extract_strided_slice %440 {offsets = [0, 0], sizes = [8, 32], strides = [1, 1]} : vector<8x64xf32> to vector<8x32xf32>
    %443 = vector.extract_strided_slice %410 {offsets = [0, 64], sizes = [8, 32], strides = [1, 1]} : vector<8x96xf32> to vector<8x32xf32>
    %444 = arith.mulf %442, %443 : vector<8x32xf32>
    %445 = arith.addf %441, %444 : vector<8x32xf32>
    %446 = math.tanh %445 : vector<8x32xf32>
    %447 = vector.extract_strided_slice %440 {offsets = [0, 32], sizes = [8, 32], strides = [1, 1]} : vector<8x64xf32> to vector<8x32xf32>
    %cst_155 = arith.constant 1.000000e+00 : f32
    %448 = vector.broadcast %cst_155 : f32 to vector<8x32xf32>
    %449 = arith.subf %448, %447 : vector<8x32xf32>
    %450 = arith.mulf %449, %446 : vector<8x32xf32>
    %451 = vector.extract_strided_slice %440 {offsets = [0, 32], sizes = [8, 32], strides = [1, 1]} : vector<8x64xf32> to vector<8x32xf32>
    %452 = vector.extract_strided_slice %393 {offsets = [0, 32], sizes = [8, 32], strides = [1, 1]} : vector<8x64xf32> to vector<8x32xf32>
    %453 = arith.mulf %451, %452 : vector<8x32xf32>
    %454 = arith.addf %450, %453 : vector<8x32xf32>
    %c0_156 = arith.constant 0 : index
    %c0_157 = arith.constant 0 : index
    %455 = vector.load %arg9[%c0_156, %c0_157] : memref<8x64xf32, #tpu.memory_space<vmem>>, vector<8x32xf32>
    tpu.vector_store %arg9[%c0_156, %c0_157], %432 {strides = array<i32>} : memref<8x64xf32, #tpu.memory_space<vmem>>, vector<8x32xf32>,
    %c0_158 = arith.constant 0 : index
    %c32_159 = arith.constant 32 : index
    %456 = vector.load %arg9[%c0_158, %c32_159] : memref<8x64xf32, #tpu.memory_space<vmem>>, vector<8x32xf32>
    tpu.vector_store %arg9[%c0_158, %c32_159], %454 {strides = array<i32>} : memref<8x64xf32, #tpu.memory_space<vmem>>, vector<8x32xf32>,
    %457 = arith.index_cast %c5_i32 : i32 to index
    %c0_160 = arith.constant 0 : index
    %c0_161 = arith.constant 0 : index
    %458 = vector.load %arg6[%457, %c0_160, %c0_161] : memref<8x8x64xf32, #tpu.memory_space<vmem>>, vector<1x8x32xf32>
    %459 = vector.shape_cast %458 : vector<1x8x32xf32> to vector<8x32xf32>
    %460 = vector.shape_cast %432 : vector<8x32xf32> to vector<1x8x32xf32>
    tpu.vector_store %arg6[%457, %c0_160, %c0_161], %460 {strides = array<i32>} : memref<8x8x64xf32, #tpu.memory_space<vmem>>, vector<1x8x32xf32>,
    %c7_i32_162 = arith.constant 7 : i32
    %461 = arith.subi %c7_i32_162, %c5_i32 : i32
    %462 = arith.index_cast %461 : i32 to index
    %c0_163 = arith.constant 0 : index
    %c32_164 = arith.constant 32 : index
    %463 = vector.load %arg6[%462, %c0_163, %c32_164] : memref<8x8x64xf32, #tpu.memory_space<vmem>>, vector<1x8x32xf32>
    %464 = vector.shape_cast %463 : vector<1x8x32xf32> to vector<8x32xf32>
    %465 = vector.shape_cast %454 : vector<8x32xf32> to vector<1x8x32xf32>
    tpu.vector_store %arg6[%462, %c0_163, %c32_164], %465 {strides = array<i32>} : memref<8x8x64xf32, #tpu.memory_space<vmem>>, vector<1x8x32xf32>,
    %c6_i32 = arith.constant 6 : i32
    %c0_165 = arith.constant 0 : index
    %c0_166 = arith.constant 0 : index
    %466 = vector.load %arg9[%c0_165, %c0_166] : memref<8x64xf32, #tpu.memory_space<vmem>>, vector<8x64xf32>
    %467 = arith.truncf %466 : vector<8x64xf32> to vector<8x64xbf16>
    %c0_167 = arith.constant 0 : index
    %c0_168 = arith.constant 0 : index
    %468 = vector.load %arg3[%c0_167, %c0_168] : memref<64x192xbf16, #tpu.memory_space<vmem>>, vector<64x192xbf16>
    %cst_169 = arith.constant dense<0.000000e+00> : vector<8x192xf32>
    %469 = tpu.matmul %467, %468, %cst_169 {dimension_numbers = #tpu.dot_dimension_numbers<[1], [0], [0], [1], [0, 0, 1, 1], [], []>} : vector<8x64xbf16>, vector<64x192xbf16>, vector<8x192xf32> -> vector<8x192xf32>
    %470 = arith.addf %469, %27 : vector<8x192xf32>
    %c8_i32_170 = arith.constant 8 : i32
    %471 = arith.muli %c6_i32, %c8_i32_170 : i32
    %472 = tpu.assume_multiple %471, 8 : i32
    %c7_i32_171 = arith.constant 7 : i32
    %473 = arith.subi %c7_i32_171, %c6_i32 : i32
    %c8_i32_172 = arith.constant 8 : i32
    %474 = arith.muli %473, %c8_i32_172 : i32
    %475 = tpu.assume_multiple %474, 8 : i32
    %c0_173 = arith.constant 0 : index
    %476 = arith.index_cast %472 : i32 to index
    %c0_174 = arith.constant 0 : index
    %477 = vector.load %arg8[%c0_173, %476, %c0_174] : memref<2x64x96xf32, #tpu.memory_space<vmem>>, vector<1x8x96xf32>
    %478 = vector.shape_cast %477 : vector<1x8x96xf32> to vector<8x96xf32>
    %c1_175 = arith.constant 1 : index
    %479 = arith.index_cast %475 : i32 to index
    %c0_176 = arith.constant 0 : index
    %480 = vector.load %arg8[%c1_175, %479, %c0_176] : memref<2x64x96xf32, #tpu.memory_space<vmem>>, vector<1x8x96xf32>
    %481 = vector.shape_cast %480 : vector<1x8x96xf32> to vector<8x96xf32>
    %482 = vector.extract_strided_slice %470 {offsets = [0, 0], sizes = [8, 96], strides = [1, 1]} : vector<8x192xf32> to vector<8x96xf32>
    %483 = vector.extract_strided_slice %470 {offsets = [0, 96], sizes = [8, 96], strides = [1, 1]} : vector<8x192xf32> to vector<8x96xf32>
    %484 = vector.extract_strided_slice %478 {offsets = [0, 0], sizes = [8, 64], strides = [1, 1]} : vector<8x96xf32> to vector<8x64xf32>
    %485 = vector.extract_strided_slice %482 {offsets = [0, 0], sizes = [8, 64], strides = [1, 1]} : vector<8x96xf32> to vector<8x64xf32>
    %486 = arith.addf %484, %485 : vector<8x64xf32>
    %487 = arith.negf %486 : vector<8x64xf32>
    %488 = math.exp %487 : vector<8x64xf32>
    %cst_177 = arith.constant 1.000000e+00 : f32
    %489 = vector.broadcast %cst_177 : f32 to vector<8x64xf32>
    %490 = arith.addf %489, %488 : vector<8x64xf32>
    %491 = arith.divf %489, %490 : vector<8x64xf32>
    %492 = vector.extract_strided_slice %478 {offsets = [0, 64], sizes = [8, 32], strides = [1, 1]} : vector<8x96xf32> to vector<8x32xf32>
    %493 = vector.extract_strided_slice %491 {offsets = [0, 0], sizes = [8, 32], strides = [1, 1]} : vector<8x64xf32> to vector<8x32xf32>
    %494 = vector.extract_strided_slice %482 {offsets = [0, 64], sizes = [8, 32], strides = [1, 1]} : vector<8x96xf32> to vector<8x32xf32>
    %495 = arith.mulf %493, %494 : vector<8x32xf32>
    %496 = arith.addf %492, %495 : vector<8x32xf32>
    %497 = math.tanh %496 : vector<8x32xf32>
    %498 = vector.extract_strided_slice %491 {offsets = [0, 32], sizes = [8, 32], strides = [1, 1]} : vector<8x64xf32> to vector<8x32xf32>
    %cst_178 = arith.constant 1.000000e+00 : f32
    %499 = vector.broadcast %cst_178 : f32 to vector<8x32xf32>
    %500 = arith.subf %499, %498 : vector<8x32xf32>
    %501 = arith.mulf %500, %497 : vector<8x32xf32>
    %502 = vector.extract_strided_slice %491 {offsets = [0, 32], sizes = [8, 32], strides = [1, 1]} : vector<8x64xf32> to vector<8x32xf32>
    %503 = vector.extract_strided_slice %466 {offsets = [0, 0], sizes = [8, 32], strides = [1, 1]} : vector<8x64xf32> to vector<8x32xf32>
    %504 = arith.mulf %502, %503 : vector<8x32xf32>
    %505 = arith.addf %501, %504 : vector<8x32xf32>
    %506 = vector.extract_strided_slice %481 {offsets = [0, 0], sizes = [8, 64], strides = [1, 1]} : vector<8x96xf32> to vector<8x64xf32>
    %507 = vector.extract_strided_slice %483 {offsets = [0, 0], sizes = [8, 64], strides = [1, 1]} : vector<8x96xf32> to vector<8x64xf32>
    %508 = arith.addf %506, %507 : vector<8x64xf32>
    %509 = arith.negf %508 : vector<8x64xf32>
    %510 = math.exp %509 : vector<8x64xf32>
    %cst_179 = arith.constant 1.000000e+00 : f32
    %511 = vector.broadcast %cst_179 : f32 to vector<8x64xf32>
    %512 = arith.addf %511, %510 : vector<8x64xf32>
    %513 = arith.divf %511, %512 : vector<8x64xf32>
    %514 = vector.extract_strided_slice %481 {offsets = [0, 64], sizes = [8, 32], strides = [1, 1]} : vector<8x96xf32> to vector<8x32xf32>
    %515 = vector.extract_strided_slice %513 {offsets = [0, 0], sizes = [8, 32], strides = [1, 1]} : vector<8x64xf32> to vector<8x32xf32>
    %516 = vector.extract_strided_slice %483 {offsets = [0, 64], sizes = [8, 32], strides = [1, 1]} : vector<8x96xf32> to vector<8x32xf32>
    %517 = arith.mulf %515, %516 : vector<8x32xf32>
    %518 = arith.addf %514, %517 : vector<8x32xf32>
    %519 = math.tanh %518 : vector<8x32xf32>
    %520 = vector.extract_strided_slice %513 {offsets = [0, 32], sizes = [8, 32], strides = [1, 1]} : vector<8x64xf32> to vector<8x32xf32>
    %cst_180 = arith.constant 1.000000e+00 : f32
    %521 = vector.broadcast %cst_180 : f32 to vector<8x32xf32>
    %522 = arith.subf %521, %520 : vector<8x32xf32>
    %523 = arith.mulf %522, %519 : vector<8x32xf32>
    %524 = vector.extract_strided_slice %513 {offsets = [0, 32], sizes = [8, 32], strides = [1, 1]} : vector<8x64xf32> to vector<8x32xf32>
    %525 = vector.extract_strided_slice %466 {offsets = [0, 32], sizes = [8, 32], strides = [1, 1]} : vector<8x64xf32> to vector<8x32xf32>
    %526 = arith.mulf %524, %525 : vector<8x32xf32>
    %527 = arith.addf %523, %526 : vector<8x32xf32>
    %c0_181 = arith.constant 0 : index
    %c0_182 = arith.constant 0 : index
    %528 = vector.load %arg9[%c0_181, %c0_182] : memref<8x64xf32, #tpu.memory_space<vmem>>, vector<8x32xf32>
    tpu.vector_store %arg9[%c0_181, %c0_182], %505 {strides = array<i32>} : memref<8x64xf32, #tpu.memory_space<vmem>>, vector<8x32xf32>,
    %c0_183 = arith.constant 0 : index
    %c32_184 = arith.constant 32 : index
    %529 = vector.load %arg9[%c0_183, %c32_184] : memref<8x64xf32, #tpu.memory_space<vmem>>, vector<8x32xf32>
    tpu.vector_store %arg9[%c0_183, %c32_184], %527 {strides = array<i32>} : memref<8x64xf32, #tpu.memory_space<vmem>>, vector<8x32xf32>,
    %530 = arith.index_cast %c6_i32 : i32 to index
    %c0_185 = arith.constant 0 : index
    %c0_186 = arith.constant 0 : index
    %531 = vector.load %arg6[%530, %c0_185, %c0_186] : memref<8x8x64xf32, #tpu.memory_space<vmem>>, vector<1x8x32xf32>
    %532 = vector.shape_cast %531 : vector<1x8x32xf32> to vector<8x32xf32>
    %533 = vector.shape_cast %505 : vector<8x32xf32> to vector<1x8x32xf32>
    tpu.vector_store %arg6[%530, %c0_185, %c0_186], %533 {strides = array<i32>} : memref<8x8x64xf32, #tpu.memory_space<vmem>>, vector<1x8x32xf32>,
    %c7_i32_187 = arith.constant 7 : i32
    %534 = arith.subi %c7_i32_187, %c6_i32 : i32
    %535 = arith.index_cast %534 : i32 to index
    %c0_188 = arith.constant 0 : index
    %c32_189 = arith.constant 32 : index
    %536 = vector.load %arg6[%535, %c0_188, %c32_189] : memref<8x8x64xf32, #tpu.memory_space<vmem>>, vector<1x8x32xf32>
    %537 = vector.shape_cast %536 : vector<1x8x32xf32> to vector<8x32xf32>
    %538 = vector.shape_cast %527 : vector<8x32xf32> to vector<1x8x32xf32>
    tpu.vector_store %arg6[%535, %c0_188, %c32_189], %538 {strides = array<i32>} : memref<8x8x64xf32, #tpu.memory_space<vmem>>, vector<1x8x32xf32>,
    %c7_i32_190 = arith.constant 7 : i32
    %c0_191 = arith.constant 0 : index
    %c0_192 = arith.constant 0 : index
    %539 = vector.load %arg9[%c0_191, %c0_192] : memref<8x64xf32, #tpu.memory_space<vmem>>, vector<8x64xf32>
    %540 = arith.truncf %539 : vector<8x64xf32> to vector<8x64xbf16>
    %c0_193 = arith.constant 0 : index
    %c0_194 = arith.constant 0 : index
    %541 = vector.load %arg3[%c0_193, %c0_194] : memref<64x192xbf16, #tpu.memory_space<vmem>>, vector<64x192xbf16>
    %cst_195 = arith.constant dense<0.000000e+00> : vector<8x192xf32>
    %542 = tpu.matmul %540, %541, %cst_195 {dimension_numbers = #tpu.dot_dimension_numbers<[1], [0], [0], [1], [0, 0, 1, 1], [], []>} : vector<8x64xbf16>, vector<64x192xbf16>, vector<8x192xf32> -> vector<8x192xf32>
    %543 = arith.addf %542, %27 : vector<8x192xf32>
    %c8_i32_196 = arith.constant 8 : i32
    %544 = arith.muli %c7_i32_190, %c8_i32_196 : i32
    %545 = tpu.assume_multiple %544, 8 : i32
    %c7_i32_197 = arith.constant 7 : i32
    %546 = arith.subi %c7_i32_197, %c7_i32_190 : i32
    %c8_i32_198 = arith.constant 8 : i32
    %547 = arith.muli %546, %c8_i32_198 : i32
    %548 = tpu.assume_multiple %547, 8 : i32
    %c0_199 = arith.constant 0 : index
    %549 = arith.index_cast %545 : i32 to index
    %c0_200 = arith.constant 0 : index
    %550 = vector.load %arg8[%c0_199, %549, %c0_200] : memref<2x64x96xf32, #tpu.memory_space<vmem>>, vector<1x8x96xf32>
    %551 = vector.shape_cast %550 : vector<1x8x96xf32> to vector<8x96xf32>
    %c1_201 = arith.constant 1 : index
    %552 = arith.index_cast %548 : i32 to index
    %c0_202 = arith.constant 0 : index
    %553 = vector.load %arg8[%c1_201, %552, %c0_202] : memref<2x64x96xf32, #tpu.memory_space<vmem>>, vector<1x8x96xf32>
    %554 = vector.shape_cast %553 : vector<1x8x96xf32> to vector<8x96xf32>
    %555 = vector.extract_strided_slice %543 {offsets = [0, 0], sizes = [8, 96], strides = [1, 1]} : vector<8x192xf32> to vector<8x96xf32>
    %556 = vector.extract_strided_slice %543 {offsets = [0, 96], sizes = [8, 96], strides = [1, 1]} : vector<8x192xf32> to vector<8x96xf32>
    %557 = vector.extract_strided_slice %551 {offsets = [0, 0], sizes = [8, 64], strides = [1, 1]} : vector<8x96xf32> to vector<8x64xf32>
    %558 = vector.extract_strided_slice %555 {offsets = [0, 0], sizes = [8, 64], strides = [1, 1]} : vector<8x96xf32> to vector<8x64xf32>
    %559 = arith.addf %557, %558 : vector<8x64xf32>
    %560 = arith.negf %559 : vector<8x64xf32>
    %561 = math.exp %560 : vector<8x64xf32>
    %cst_203 = arith.constant 1.000000e+00 : f32
    %562 = vector.broadcast %cst_203 : f32 to vector<8x64xf32>
    %563 = arith.addf %562, %561 : vector<8x64xf32>
    %564 = arith.divf %562, %563 : vector<8x64xf32>
    %565 = vector.extract_strided_slice %551 {offsets = [0, 64], sizes = [8, 32], strides = [1, 1]} : vector<8x96xf32> to vector<8x32xf32>
    %566 = vector.extract_strided_slice %564 {offsets = [0, 0], sizes = [8, 32], strides = [1, 1]} : vector<8x64xf32> to vector<8x32xf32>
    %567 = vector.extract_strided_slice %555 {offsets = [0, 64], sizes = [8, 32], strides = [1, 1]} : vector<8x96xf32> to vector<8x32xf32>
    %568 = arith.mulf %566, %567 : vector<8x32xf32>
    %569 = arith.addf %565, %568 : vector<8x32xf32>
    %570 = math.tanh %569 : vector<8x32xf32>
    %571 = vector.extract_strided_slice %564 {offsets = [0, 32], sizes = [8, 32], strides = [1, 1]} : vector<8x64xf32> to vector<8x32xf32>
    %cst_204 = arith.constant 1.000000e+00 : f32
    %572 = vector.broadcast %cst_204 : f32 to vector<8x32xf32>
    %573 = arith.subf %572, %571 : vector<8x32xf32>
    %574 = arith.mulf %573, %570 : vector<8x32xf32>
    %575 = vector.extract_strided_slice %564 {offsets = [0, 32], sizes = [8, 32], strides = [1, 1]} : vector<8x64xf32> to vector<8x32xf32>
    %576 = vector.extract_strided_slice %539 {offsets = [0, 0], sizes = [8, 32], strides = [1, 1]} : vector<8x64xf32> to vector<8x32xf32>
    %577 = arith.mulf %575, %576 : vector<8x32xf32>
    %578 = arith.addf %574, %577 : vector<8x32xf32>
    %579 = vector.extract_strided_slice %554 {offsets = [0, 0], sizes = [8, 64], strides = [1, 1]} : vector<8x96xf32> to vector<8x64xf32>
    %580 = vector.extract_strided_slice %556 {offsets = [0, 0], sizes = [8, 64], strides = [1, 1]} : vector<8x96xf32> to vector<8x64xf32>
    %581 = arith.addf %579, %580 : vector<8x64xf32>
    %582 = arith.negf %581 : vector<8x64xf32>
    %583 = math.exp %582 : vector<8x64xf32>
    %cst_205 = arith.constant 1.000000e+00 : f32
    %584 = vector.broadcast %cst_205 : f32 to vector<8x64xf32>
    %585 = arith.addf %584, %583 : vector<8x64xf32>
    %586 = arith.divf %584, %585 : vector<8x64xf32>
    %587 = vector.extract_strided_slice %554 {offsets = [0, 64], sizes = [8, 32], strides = [1, 1]} : vector<8x96xf32> to vector<8x32xf32>
    %588 = vector.extract_strided_slice %586 {offsets = [0, 0], sizes = [8, 32], strides = [1, 1]} : vector<8x64xf32> to vector<8x32xf32>
    %589 = vector.extract_strided_slice %556 {offsets = [0, 64], sizes = [8, 32], strides = [1, 1]} : vector<8x96xf32> to vector<8x32xf32>
    %590 = arith.mulf %588, %589 : vector<8x32xf32>
    %591 = arith.addf %587, %590 : vector<8x32xf32>
    %592 = math.tanh %591 : vector<8x32xf32>
    %593 = vector.extract_strided_slice %586 {offsets = [0, 32], sizes = [8, 32], strides = [1, 1]} : vector<8x64xf32> to vector<8x32xf32>
    %cst_206 = arith.constant 1.000000e+00 : f32
    %594 = vector.broadcast %cst_206 : f32 to vector<8x32xf32>
    %595 = arith.subf %594, %593 : vector<8x32xf32>
    %596 = arith.mulf %595, %592 : vector<8x32xf32>
    %597 = vector.extract_strided_slice %586 {offsets = [0, 32], sizes = [8, 32], strides = [1, 1]} : vector<8x64xf32> to vector<8x32xf32>
    %598 = vector.extract_strided_slice %539 {offsets = [0, 32], sizes = [8, 32], strides = [1, 1]} : vector<8x64xf32> to vector<8x32xf32>
    %599 = arith.mulf %597, %598 : vector<8x32xf32>
    %600 = arith.addf %596, %599 : vector<8x32xf32>
    %c0_207 = arith.constant 0 : index
    %c0_208 = arith.constant 0 : index
    %601 = vector.load %arg9[%c0_207, %c0_208] : memref<8x64xf32, #tpu.memory_space<vmem>>, vector<8x32xf32>
    tpu.vector_store %arg9[%c0_207, %c0_208], %578 {strides = array<i32>} : memref<8x64xf32, #tpu.memory_space<vmem>>, vector<8x32xf32>,
    %c0_209 = arith.constant 0 : index
    %c32_210 = arith.constant 32 : index
    %602 = vector.load %arg9[%c0_209, %c32_210] : memref<8x64xf32, #tpu.memory_space<vmem>>, vector<8x32xf32>
    tpu.vector_store %arg9[%c0_209, %c32_210], %600 {strides = array<i32>} : memref<8x64xf32, #tpu.memory_space<vmem>>, vector<8x32xf32>,
    %603 = arith.index_cast %c7_i32_190 : i32 to index
    %c0_211 = arith.constant 0 : index
    %c0_212 = arith.constant 0 : index
    %604 = vector.load %arg6[%603, %c0_211, %c0_212] : memref<8x8x64xf32, #tpu.memory_space<vmem>>, vector<1x8x32xf32>
    %605 = vector.shape_cast %604 : vector<1x8x32xf32> to vector<8x32xf32>
    %606 = vector.shape_cast %578 : vector<8x32xf32> to vector<1x8x32xf32>
    tpu.vector_store %arg6[%603, %c0_211, %c0_212], %606 {strides = array<i32>} : memref<8x8x64xf32, #tpu.memory_space<vmem>>, vector<1x8x32xf32>,
    %c7_i32_213 = arith.constant 7 : i32
    %607 = arith.subi %c7_i32_213, %c7_i32_190 : i32
    %608 = arith.index_cast %607 : i32 to index
    %c0_214 = arith.constant 0 : index
    %c32_215 = arith.constant 32 : index
    %609 = vector.load %arg6[%608, %c0_214, %c32_215] : memref<8x8x64xf32, #tpu.memory_space<vmem>>, vector<1x8x32xf32>
    %610 = vector.shape_cast %609 : vector<1x8x32xf32> to vector<8x32xf32>
    %611 = vector.shape_cast %600 : vector<8x32xf32> to vector<1x8x32xf32>
    tpu.vector_store %arg6[%608, %c0_214, %c32_215], %611 {strides = array<i32>} : memref<8x8x64xf32, #tpu.memory_space<vmem>>, vector<1x8x32xf32>,
    %c8_i32_216 = arith.constant 8 : i32
    %c0_217 = arith.constant 0 : index
    %c0_218 = arith.constant 0 : index
    %612 = vector.load %arg9[%c0_217, %c0_218] : memref<8x64xf32, #tpu.memory_space<vmem>>, vector<8x32xf32>
    %c0_219 = arith.constant 0 : index
    %c0_220 = arith.constant 0 : index
    %c0_221 = arith.constant 0 : index
    %613 = vector.load %arg7[%c0_219, %c0_220, %c0_221] : memref<2x8x32xf32, #tpu.memory_space<vmem>>, vector<1x8x32xf32>
    %614 = vector.shape_cast %613 : vector<1x8x32xf32> to vector<8x32xf32>
    %615 = vector.shape_cast %612 : vector<8x32xf32> to vector<1x8x32xf32>
    tpu.vector_store %arg7[%c0_219, %c0_220, %c0_221], %615 {strides = array<i32>} : memref<2x8x32xf32, #tpu.memory_space<vmem>>, vector<1x8x32xf32>,
    %c0_222 = arith.constant 0 : index
    %c32_223 = arith.constant 32 : index
    %616 = vector.load %arg9[%c0_222, %c32_223] : memref<8x64xf32, #tpu.memory_space<vmem>>, vector<8x32xf32>
    %c1_224 = arith.constant 1 : index
    %c0_225 = arith.constant 0 : index
    %c0_226 = arith.constant 0 : index
    %617 = vector.load %arg7[%c1_224, %c0_225, %c0_226] : memref<2x8x32xf32, #tpu.memory_space<vmem>>, vector<1x8x32xf32>
    %618 = vector.shape_cast %617 : vector<1x8x32xf32> to vector<8x32xf32>
    %619 = vector.shape_cast %616 : vector<8x32xf32> to vector<1x8x32xf32>
    tpu.vector_store %arg7[%c1_224, %c0_225, %c0_226], %619 {strides = array<i32>} : memref<2x8x32xf32, #tpu.memory_space<vmem>>, vector<1x8x32xf32>,
    return
  }
}

</mosaic_0001>

<bundles_post_ra>
// kernel: tpu_custom_call.1
= control target key start
LH: loop header
LB: loop body
LE: loop exit
PB: predicated region body
PF: predicated region fallthrough
CT: control target
= control target key end

     0   :  { %13 = vsyncpa [#allocation5], 0  ;;  %v2156_v2 = vmov 0   ;;  %vm131_vm0 = vcmask 1040384   ;;  %s2704_s0 = inlined_call_operand.vmem [shape: s32[64,1], index: 0, kind: input, shape index: {}]   ;;  %s2705_s1 = inlined_call_operand.vmem [shape: bf16[50,32], index: 1, kind: input, shape index: {}]   ;;  %s2706_s2 = inlined_call_operand.vmem [shape: bf16[32,192], index: 2, kind: input, shape index: {}]   ;;  %s2707_s3 = inlined_call_operand.vmem [shape: bf16[64,192], index: 3, kind: input, shape index: {}]   ;;  %s2708_s4 = inlined_call_operand.vmem [shape: f32[1,192], index: 4, kind: input, shape index: {}]   ;;  %s2709_s5 = inlined_call_operand.vmem [shape: f32[1,192], index: 5, kind: input, shape index: {}]   ;;  %s2710_s6 = inlined_call_operand.hbm [shape: f32[8,8,64], index: 6, kind: output, shape index: {0}]   ;;  %s2711_s7 = inlined_call_operand.hbm [shape: f32[2,8,32], index: 7, kind: output, shape index: {1}]  }
   0x1   :  { %v30_v0 = vld [vmem:[%s2704_s0 + $0x10] sm:$0xff]  ;;  %v28_v1 = vld [vmem:[%s2704_s0] sm:$0xff]  ;;  %1977 = vset.pattern.permute.xlu1 %v2156_v2  ;;  %1976 = vset.pattern.permute.xlu0 %v2156_v2  ;;  %v31_v3 = vld [vmem:[%s2704_s0 + $0x18] sm:$0xff] }
   0x2   :  { %45 = vperm.xlu1 %1977, %v30_v0   ;;  %39 = vperm.xlu0 %1976, %v28_v1   ;;  %v29_v4 = vld [vmem:[%s2704_s0 + $0x8] sm:$0xff]  ;;  %v1978_v5 = vld [vmem:[%s2705_s1] sm:$0xff]   ;;  %v1980_v9 = vld [vmem:[%s2705_s1 + $0x10] sm:$0xff]  }
   0x3   :  { %285 = vmatprep.mubr.bf16.mxu1 %v2156_v2  ;;  %v1979_v6 = vld [vmem:[%s2705_s1 + $0x8] sm:$0xff]   ;;  %v32_v8 = vld [vmem:[%s2704_s0 + $0x20] sm:$0xff]  ;;  %1950 = vmatprep.subr.bf16.mxu0 %v1978_v5  ;;  %v35_v10 = vld [vmem:[%s2704_s0 + $0x38] sm:$0xff] }
   0x4   :  { %v33_v7 = vld [vmem:[%s2704_s0 + $0x28] sm:$0xff]  ;;  %1951 = vmatpush3.bf16.msra.mxu0 %v1978_v5  ;;  %v34_v11 = vld [vmem:[%s2704_s0 + $0x30] sm:$0xff]  ;;  %v1981_v12 = vld [vmem:[%s2705_s1 + $0x18] ss:$0 sps:$4 sm:$0x11]  }
   0x5   :  { %1952 = vmatprep.subr.bf16.mxu0 %v1979_v6 }
   0x6   :  { %48 = vperm.xlu1 %1977, %v31_v3   ;;  %42 = vperm.xlu0 %1976, %v29_v4  }
   0x8   :  { %1953 = vmatpush3.bf16.msra.mxu0 %v1979_v6 }
   0x9   :  { %1954 = vmatprep.subr.bf16.mxu0 %v1980_v9 }
   0xa   :  { %54 = vperm.xlu1 %1977, %v33_v7   ;;  %51 = vperm.xlu0 %1976, %v32_v8  }
   0xb   :  { %14 = vsyncpa [#allocation7], 0  ;;  %v133_v13 = vsel %vm131_vm0, %v1981_v12, 0  ;;  %v2247_v14 = vld [vmem:[%s2707_s3 + $0x4] ss:$8 sps:$4 sm:$0xff]   ;;  %vm408_vm1 = vcmask 523264   ;;  %v36_v18 = vlaneseq }
   0xc   :  { %1955 = vmatpush3.bf16.msra.mxu0 %v1980_v9  ;;  %v2157_v15 = vmov 0.0   ;;  %v1994_v16 = vld [vmem:[%s2706_s2 + $0x4] ss:$8 sps:$4 sm:$0xff]   ;;  %v1996_v17 = vld [vmem:[%s2706_s2] ss:$8 sps:$4 sm:$0xff]   ;;  %vm118_vm6 = vcmask 408576  }
   0xd   :  { %1966 = vmatprep.subr.msk.bf16.mxu0 %vm131_vm0, %v1981_v12  ;;  %409 = vst.msk [vmem:[#allocation3] sm:$0xff] %vm408_vm1, %v2157_v15  ;;  %253 = vmatprep.subr.bf16.mxu1 %v1994_v16  ;;  %v37_v19 = vand.u32 127, %v36_v18  ;;  %v2261_v30 = vld [vmem:[%s2707_s3] ss:$8 sps:$4 sm:$0xff]   ;;  %v2266_v33 = vld [vmem:[%s2707_s3 + $0x14] ss:$8 sps:$4 sm:$0xff]  }
   0xe   :  { %60 = vperm.xlu1 %1977, %v35_v10   ;;  %57 = vperm.xlu0 %1976, %v34_v11   ;;  %v2274_v37 = vld [vmem:[%s2707_s3 + $0x10] ss:$8 sps:$4 sm:$0xff]   ;;  %v2280_v40 = vld [vmem:[%s2707_s3 + $0x24] ss:$8 sps:$4 sm:$0xff]   ;;  %v2287_v44 = vld [vmem:[%s2707_s3 + $0x20] ss:$8 sps:$4 sm:$0xff]  }
   0xf   :  { %254 = vmatpush1.bf16.msra.mxu1 %v1996_v17  ;;  %v2293_v45 = vld [vmem:[%s2707_s3 + $0x34] ss:$8 sps:$4 sm:$0xff]   ;;  %v2300_v46 = vld [vmem:[%s2707_s3 + $0x30] ss:$8 sps:$4 sm:$0xff]   ;;  %v211_v51 = vshrl.u32 %v36_v18, 7  ;;  %vm240_vm11 = vcmask 261120  }
  0x10   :  { %1957 = vmatpush3.bf16.msra.mxu0 %v133_v13  ;;  %v1997_v49 = vld [vmem:[%s2706_s2 + $0x14] ss:$8 sps:$4 sm:$0xff]   ;;  %v1999_v50 = vld [vmem:[%s2706_s2 + $0x10] ss:$8 sps:$4 sm:$0xff]   ;;  %v410_v53 = vld [vmem:[%s2709_s5] sm:$0x3] }
  0x11   :  { %475 = vmatprep.subr.bf16.mxu0 %v2247_v14  ;;  %255 = vmatprep.subr.bf16.mxu1 %v1997_v49  ;;  %v216_v52 = vsub.s32 1, %v211_v51  ;;  %v212_v63 = vsub.s32 0, %v211_v51  ;;  %s2158_s2 = smov 64   ;;  %v208_v11 = vld [vmem:[%s2708_s4] sm:$0x3]  ;;  %vm326_vm12 = vcmask 785408  }
  0x12   :  { %s2159_s4 = smov 32   ;;  %s2160_s0 = smov 96   ;;  %vm587_vm13 = vcmask 523520  }
  0x13   :  { %256 = vmatpush1.bf16.msra.mxu1 %v1999_v50  ;;  %v2331_v54 = vrot.slane %v410_v53, %v216_v52  ;;  %v2339_v5 = vrot.slane %v410_v53, %v212_v63  ;;  %v213_v12 = vrot.slane %v208_v11, %v212_v63  ;;  %v217_v13 = vrot.slane %v208_v11, %v216_v52 }
  0x14   :  { %v2303_v47 = vld [vmem:[#allocation3] sm:$0xff]  ;;  %645 = vmatprep.subr.bf16.mxu1 %v2247_v14 }
  0x15   :  { %v423_v48 = vpack.c.bf16 %v2303_v47, %v2303_v47 }
  0x81   :  { %v46_v20 = vpop.permute.xlu1 %45  ;;  %v40_v21 = vpop.permute.xlu0 %39 }
  0x82   :  { %vm64_vm2 = vcmp.eq.s32.totalorder %v37_v19, %v46_v20  ;;  %vm62_vm3 = vcmp.eq.s32.totalorder %v37_v19, %v40_v21 }
  0x83   :  { %v1832_v24 = vsel %vm64_vm2, 1.0, %v2157_v15  ;;  %v1830_v26 = vsel %vm62_vm3, 1.0, %v2157_v15 }
  0x85   :  { %v49_v22 = vpop.permute.xlu1 %48  ;;  %v43_v23 = vpop.permute.xlu0 %42 }
  0x86   :  { %vm65_vm4 = vcmp.eq.s32.totalorder %v37_v19, %v49_v22  ;;  %vm63_vm5 = vcmp.eq.s32.totalorder %v37_v19, %v43_v23 }
  0x87   :  { %v1833_v25 = vsel %vm65_vm4, 1.0, %v2157_v15  ;;  %v1831_v27 = vsel %vm63_vm5, 1.0, %v2157_v15 }
  0x88   :  { %v87_v28 = vpack.c.bf16 %v1833_v25, %v1832_v24  ;;  %v86_v29 = vpack.c.bf16 %v1831_v27, %v1830_v26 }
  0x89   :  { %v55_v31 = vpop.permute.xlu1 %54  ;;  %v52_v32 = vpop.permute.xlu0 %51 }
  0x8a   :  { %vm67_vm7 = vcmp.eq.s32.totalorder %v37_v19, %v55_v31  ;;  %vm66_vm8 = vcmp.eq.s32.totalorder %v37_v19, %v52_v32  ;;  %1958 = vmatprep.mubr.msk.bf16.mxu0 %vm118_vm6, %v86_v29 }
  0x8b   :  { %v1835_v34 = vsel %vm67_vm7, 1.0, %v2157_v15  ;;  %v1834_v35 = vsel %vm66_vm8, 1.0, %v2157_v15  ;;  %1959 = vmatmul.mubr.msk.bf16.vlgmr.msra.gmra.mrb[0].mxu0 %vm118_vm6, %v87_v28 }
  0x8c   :  { %v88_v36 = vpack.c.bf16 %v1835_v34, %v1834_v35  ;;  %476 = vmatpush1.bf16.msra.mxu0 %v2261_v30 }
  0x8d   :  { %v61_v38 = vpop.permute.xlu1 %60  ;;  %v58_v39 = vpop.permute.xlu0 %57  ;;  %477 = vmatprep.subr.bf16.mxu0 %v2266_v33 }
  0x8e   :  { %vm69_vm9 = vcmp.eq.s32.totalorder %v37_v19, %v61_v38  ;;  %vm68_vm10 = vcmp.eq.s32.totalorder %v37_v19, %v58_v39  ;;  %1962 = vmatprep.mubr.msk.bf16.mxu0 %vm118_vm6, %v88_v36 }
  0x8f   :  { %v1837_v41 = vsel %vm69_vm9, 1.0, %v2157_v15  ;;  %v1836_v42 = vsel %vm68_vm10, 1.0, %v2157_v15 }
  0x90   :  { %v89_v43 = vpack.c.bf16 %v1837_v41, %v1836_v42  ;;  %478 = vmatpush1.bf16.msra.mxu0 %v2274_v37 }
  0x91   :  { %479 = vmatprep.subr.bf16.mxu0 %v2280_v40 }
  0x93   :  { %1963 = vmatmul.mubr.msk.bf16.gmra.mrb[4].mxu0 %vm118_vm6, %v89_v43 }
  0x94   :  { %480 = vmatpush1.bf16.msra.mxu0 %v2287_v44  ;;  %507 = vmatprep.mubr.bf16.mxu0 %v2156_v2 }
  0x95   :  { %481 = vmatprep.subr.bf16.mxu0 %v2293_v45 }
  0x98   :  { %482 = vmatpush1.bf16.msra.mxu0 %v2300_v46 }
  0x99   :  { %816 = vmatprep.subr.bf16.mxu0 %v2247_v14 }
  0x9b   :  { %1862 = vmatmul.mubr.msk.bf16.vlgmr.msra.gmra.mrb[8].mxu0 %vm408_vm1, %v423_v48 }
  0x9c   :  { %817 = vmatpush1.bf16.msra.mxu0 %v2261_v30  ;;  %848 = vmatprep.mubr.bf16.mxu0 %v2156_v2 }
  0x9d   :  { %818 = vmatprep.subr.bf16.mxu0 %v2266_v33 }
  0xa0   :  { %819 = vmatpush1.bf16.msra.mxu0 %v2274_v37 }
  0xa1   :  { %820 = vmatprep.subr.bf16.mxu0 %v2280_v40 }
  0xa4   :  { %821 = vmatpush1.bf16.msra.mxu0 %v2287_v44 }
  0xa5   :  { %822 = vmatprep.subr.bf16.mxu0 %v2293_v45 }
  0xa8   :  { %823 = vmatpush1.bf16.msra.mxu0 %v2300_v46 }
  0xa9   :  { %1158 = vmatprep.subr.bf16.mxu0 %v2247_v14 }
 0x15e   :  { %v1960_v55 = vpop.f32.mrb[0].mxu0 }
 0x15f   :  { %v169_v56 = vpop.f32.mrb[1].mxu0 }
 0x160   :  { %v1961_v57 = vpop.f32.mrb[2].mxu0 }
 0x161   :  { %v201_v58 = vpack.c.bf16 %v1961_v57, %v1960_v55  ;;  %v172_v59 = vpop.f32.mrb[3].mxu0 }
 0x162   :  { %v200_v60 = vpack.c.bf16 %v172_v59, %v169_v56 }
 0x164   :  { %1850 = vmatmul.mubr.msk.bf16.vlgmr.msra.gmra.mrb[0].mxu1 %vm240_vm11, %v200_v60 }
 0x165   :  { %295 = vmatprep.mubr.bf16.mxu1 %v2156_v2  ;;  %646 = vmatpush1.bf16.msra.mxu1 %v2261_v30 }
 0x166   :  { %v1964_v61 = vpop.f32.mrb[4].mxu0  ;;  %647 = vmatprep.subr.bf16.mxu1 %v2266_v33 }
 0x167   :  { %v185_v62 = vpop.f32.mrb[5].mxu0 }
 0x168   :  { %v1965_v0 = vpop.f32.mrb[6].mxu0 }
 0x169   :  { %v203_v1 = vpack.c.bf16 %v1965_v0, %v1964_v61  ;;  %v188_v3 = vpop.f32.mrb[7].mxu0  ;;  %648 = vmatpush1.bf16.msra.mxu1 %v2274_v37 }
 0x16a   :  { %v202_v4 = vpack.c.bf16 %v188_v3, %v185_v62  ;;  %649 = vmatprep.subr.bf16.mxu1 %v2280_v40 }
 0x16c   :  { %1851 = vmatmul.mubr.msk.bf16.gmra.mrb[4].mxu1 %vm240_vm11, %v201_v58 }
 0x16d   :  { %305 = vmatprep.mubr.bf16.mxu1 %v2156_v2  ;;  %650 = vmatpush1.bf16.msra.mxu1 %v2287_v44 }
 0x16e   :  { %v509_v6 = vpop.f32.mrb[8].mxu0  ;;  %651 = vmatprep.subr.bf16.mxu1 %v2293_v45 }
 0x16f   :  { %v2346_v7 = vadd.f32 %v509_v6, %v2339_v5  ;;  %v2348_v8 = vpop.f32.mrb[9].mxu0 }
 0x170   :  { %v513_v9 = vpop.f32.mrb[10].mxu0  ;;  %v512_v60 = vadd.f32 %v2348_v8, %v2331_v54 }
 0x171   :  { %528 = vrot.lane.b32.xlu0 %v2346_v7, %s2158_s2  ;;  %v514_v10 = vpop.f32.mrb[11].mxu0  ;;  %652 = vmatpush1.bf16.msra.mxu1 %v2300_v46 }
 0x172   :  { %987 = vmatprep.subr.bf16.mxu1 %v2247_v14 }
 0x174   :  { %1852 = vmatmul.mubr.msk.bf16.gmra.mrb[8].mxu1 %vm240_vm11, %v202_v4 }
 0x175   :  { %315 = vmatprep.mubr.bf16.mxu1 %v2156_v2 }
 0x17c   :  { %1853 = vmatmul.mubr.msk.bf16.gmra.mrb[12].mxu1 %vm240_vm11, %v203_v1 }
 0x17d   :  { %677 = vmatprep.mubr.bf16.mxu1 %v2156_v2 }
 0x1e3   :  { %v529_v61 = vpop.permute.xlu0 %528 }
 0x237   :  { %v287_v15 = vpop.f32.mrb[0].mxu1 }
 0x238   :  { %v2361_v16 = vadd.f32 %v287_v15, %v213_v12  ;;  %v289_v17 = vpop.f32.mrb[1].mxu1 }
 0x239   :  { %v2363_v14 = vadd.f32 %v289_v17, %v217_v13  ;;  %v291_v18 = vpop.f32.mrb[2].mxu1 }
 0x23a   :  { %327 = vst.msk [vmem:[#allocation2] sm:$0xff] %vm326_vm12, %v2361_v16  ;;  %v2367_v19 = vadd.f32 %v291_v18, %v213_v12  ;;  %v293_v20 = vpop.f32.mrb[3].mxu1 }
 0x23b   :  { %v2369_v21 = vadd.f32 %v293_v20, %v217_v13 }
 0x23c   :  { %328 = vst.msk [vmem:[#allocation2 + $0x8] sm:$0xff] %vm326_vm12, %v2367_v19 }
 0x23f   :  { %v297_v22 = vpop.f32.mrb[4].mxu1 }
 0x240   :  { %v2373_v23 = vadd.f32 %v297_v22, %v213_v12  ;;  %v299_v24 = vpop.f32.mrb[5].mxu1 }
 0x241   :  { %v2375_v25 = vadd.f32 %v299_v24, %v217_v13  ;;  %v301_v26 = vpop.f32.mrb[6].mxu1  ;;  %v516_v27 = vld [vmem:[#allocation2] sm:$0xff] }
 0x242   :  { %329 = vst.msk [vmem:[#allocation2 + $0x10] sm:$0xff] %vm326_vm12, %v2373_v23  ;;  %v2379_v28 = vadd.f32 %v301_v26, %v213_v12  ;;  %v303_v29 = vpop.f32.mrb[7].mxu1  ;;  %v520_v31 = vadd.f32 %v516_v27, %v2346_v7 }
 0x243   :  { %v2382_v32 = vadd.f32 %v303_v29, %v217_v13 }
 0x244   :  { %330 = vst.msk [vmem:[#allocation2 + $0x18] sm:$0xff] %vm326_vm12, %v2379_v28  ;;  %v1863_v34 = vmul.f32 -1.442695, %v520_v31 }
 0x246   :  { %2012 = vpow2.f32 %v1863_v34 }
 0x247   :  { %v307_v35 = vpop.f32.mrb[8].mxu1 }
 0x248   :  { %v2386_v36 = vadd.f32 %v307_v35, %v213_v12  ;;  %v309_v38 = vpop.f32.mrb[9].mxu1 }
 0x249   :  { %v2388_v39 = vadd.f32 %v309_v38, %v217_v13  ;;  %v311_v41 = vpop.f32.mrb[10].mxu1 }
 0x24a   :  { %331 = vst.msk [vmem:[#allocation2 + $0x20] sm:$0xff] %vm326_vm12, %v2386_v36  ;;  %v2392_v42 = vadd.f32 %v311_v41, %v213_v12  ;;  %v313_v43 = vpop.f32.mrb[11].mxu1 }
 0x24b   :  { %v2394_v48 = vadd.f32 %v313_v43, %v217_v13 }
 0x24c   :  { %332 = vst.msk [vmem:[#allocation2 + $0x28] sm:$0xff] %vm326_vm12, %v2392_v42 }
 0x24f   :  { %v317_v49 = vpop.f32.mrb[12].mxu1 }
 0x250   :  { %v2013_v50 = vpop.eup %2012  ;;  %v318_v51 = vadd.f32 %v317_v49, %v213_v12  ;;  %v319_v52 = vpop.f32.mrb[13].mxu1 }
 0x251   :  { %v2398_v53 = vadd.f32 %v319_v52, %v217_v13  ;;  %v321_v55 = vpop.f32.mrb[14].mxu1  ;;  %v524_v56 = vadd.f32 1.0, %v2013_v50 }
 0x252   :  { %333 = vst.msk [vmem:[#allocation2 + $0x30] sm:$0xff] %vm326_vm12, %v318_v51  ;;  %v322_v57 = vadd.f32 %v321_v55, %v213_v12  ;;  %v323_v58 = vpop.f32.mrb[15].mxu1 }
 0x253   :  { %v324_v59 = vadd.f32 %v323_v58, %v217_v13  ;;  %2014 = vrcp.f32 %v524_v56 }
 0x254   :  { %334 = vst.msk [vmem:[#allocation2 + $0x38] sm:$0xff] %vm326_vm12, %v322_v57  ;;  %379 = vrot.lane.b32.xlu1 %v322_v57, %s2159_s4 }
 0x255   :  { %381 = vrot.lane.b32.xlu0 %v324_v59, %s2159_s4 }
 0x258   :  { %551 = vrot.lane.b32.xlu1 %v2346_v7, %s2159_s4 }
 0x259   :  { %553 = vrot.lane.b32.xlu0 %v512_v60, %s2159_s4 }
 0x25c   :  { %564 = vrot.lane.b32.xlu1 %v512_v60, %s2160_s0 }
 0x25d   :  { %v2015_v62 = vpop.eup %2014 }
 0x25e   :  { %v531_v63 = vmul.f32 %v2015_v62, %v529_v61 }
 0x260   :  { %533 = vrot.lane.b32.xlu0 %v531_v63, %s2158_s2  ;;  %v687_v63 = vld [vmem:[#allocation2 + $0x8] sm:$0xff] }
 0x2c6   :  { %v380_v0 = vpop.permute.xlu1 %379 }
 0x2c7   :  { %v382_v1 = vpop.permute.xlu0 %381 }
 0x2c8   :  { %v390_v3 = vsel %vm240_vm11, %v380_v0, %v382_v1 }
 0x2c9   :  { %407 = vst.msk [vmem:[#allocation2 + $0x78] sm:$0xff] %vm326_vm12, %v390_v3 }
 0x2ca   :  { %v552_v4 = vpop.permute.xlu1 %551 }
 0x2cb   :  { %v554_v6 = vpop.permute.xlu0 %553 }
 0x2cc   :  { %v555_v7 = vsel %vm240_vm11, %v552_v4, %v554_v6 }
 0x2ce   :  { %v565_v20 = vpop.permute.xlu1 %564 }
 0x2d0   :  { %v519_v8 = vld [vmem:[#allocation2 + $0x78] sm:$0xff] }
 0x2d1   :  { %v557_v9 = vadd.f32 %v555_v7, %v519_v8 }
 0x2d2   :  { %v534_v10 = vpop.permute.xlu0 %533 }
 0x2d3   :  { %v1864_v11 = vmul.f32 -1.442695, %v557_v9  ;;  %v536_v12 = vadd.f32 %v534_v10, %v516_v27  ;;  %v538_v27 = vsub.f32 1.0, %v2015_v62 }
 0x2d5   :  { %2016 = vpow2.f32 %v1864_v11 }
 0x2d6   :  { %2018 = vtanh.f32 %v536_v12 }
 0x2df   :  { %v2017_v13 = vpop.eup %2016 }
 0x2e0   :  { %v2019_v15 = vpop.eup %2018  ;;  %v561_v17 = vadd.f32 1.0, %v2017_v13 }
 0x2e1   :  { %540 = vrot.lane.b32.xlu0 %v2019_v15, %s2160_s0 }
 0x2e2   :  { %2020 = vrcp.f32 %v561_v17 }
 0x2ec   :  { %v2021_v18 = vpop.eup %2020 }
 0x2ed   :  { %v567_v22 = vmul.f32 %v2021_v18, %v565_v20  ;;  %v574_v49 = vsub.f32 1.0, %v2021_v18  ;;  %v580_v52 = vmul.f32 %v2021_v18, %v2303_v47 }
 0x2ef   :  { %569 = vrot.lane.b32.xlu1 %v567_v22, %s2158_s2 }
 0x2f3   :  { %545 = vrot.lane.b32.xlu1 %v2303_v47, %s2159_s4 }
 0x353   :  { %v541_v29 = vpop.permute.xlu0 %540 }
 0x354   :  { %v543_v34 = vmul.f32 %v541_v29, %v538_v27 }
 0x361   :  { %v570_v24 = vpop.permute.xlu1 %569 }
 0x362   :  { %v572_v26 = vadd.f32 %v570_v24, %v519_v8 }
 0x364   :  { %2022 = vtanh.f32 %v572_v26 }
 0x365   :  { %v546_v31 = vpop.permute.xlu1 %545 }
 0x366   :  { %v548_v35 = vmul.f32 %v2015_v62, %v546_v31 }
 0x368   :  { %v549_v38 = vadd.f32 %v548_v35, %v543_v34 }
 0x36a   :  { %583 = vrot.lane.b32.xlu1 %v549_v38, %s2160_s0 }
 0x36e   :  { %v2023_v41 = vpop.eup %2022  ;;  %375 = vrot.lane.b32.xlu1 %v318_v51, %s2159_s4 }
 0x36f   :  { %576 = vrot.lane.b32.xlu0 %v2023_v41, %s2160_s0 }
 0x3dc   :  { %v584_v43 = vpop.permute.xlu1 %583 }
 0x3dd   :  { %586 = vst.msk [vmem:[#allocation3] sm:$0xff] %vm240_vm11, %v584_v43  ;;  %589 = vst.msk [vmem:[#allocation4] sm:$0xff] %vm240_vm11, %v584_v43 }
 0x3e0   :  { %v376_v9 = vpop.permute.xlu1 %375 }
 0x3e1   :  { %v577_v50 = vpop.permute.xlu0 %576 }
 0x3e2   :  { %v579_v55 = vmul.f32 %v577_v50, %v574_v49 }
 0x3e4   :  { %v581_v56 = vadd.f32 %v580_v52, %v579_v55 }
 0x3e6   :  { %588 = vst.msk [vmem:[#allocation3] sm:$0xff] %vm587_vm13, %v581_v56  ;;  %591 = vst.msk [vmem:[#allocation4 + $0x38] sm:$0xff] %vm587_vm13, %v581_v56 }
 0x3ed   :  { %v2426_v57 = vld [vmem:[#allocation3] sm:$0xff] }
 0x3ee   :  { %v593_v51 = vpack.c.bf16 %v2426_v57, %v2426_v57 }
 0x3f0   :  { %1873 = vmatmul.mubr.msk.bf16.vlgmr.msra.gmra.mrb[16].mxu1 %vm408_vm1, %v593_v51 }
 0x3f1   :  { %988 = vmatpush1.bf16.msra.mxu1 %v2261_v30  ;;  %1019 = vmatprep.mubr.bf16.mxu1 %v2156_v2 }
 0x3f2   :  { %989 = vmatprep.subr.bf16.mxu1 %v2266_v33 }
 0x3f5   :  { %990 = vmatpush1.bf16.msra.mxu1 %v2274_v37 }
 0x3f6   :  { %991 = vmatprep.subr.bf16.mxu1 %v2280_v40 }
 0x3f9   :  { %992 = vmatpush1.bf16.msra.mxu1 %v2287_v44 }
 0x3fa   :  { %993 = vmatprep.subr.bf16.mxu1 %v2293_v45 }
 0x3fd   :  { %994 = vmatpush1.bf16.msra.mxu1 %v2300_v46 }
 0x4c3   :  { %v679_v47 = vpop.f32.mrb[16].mxu1 }
 0x4c4   :  { %v680_v58 = vadd.f32 %v679_v47, %v2339_v5  ;;  %v681_v59 = vpop.f32.mrb[17].mxu1 }
 0x4c5   :  { %v683_v60 = vpop.f32.mrb[18].mxu1  ;;  %v682_v62 = vadd.f32 %v681_v59, %v2331_v54 }
 0x4c6   :  { %v684_v61 = vpop.f32.mrb[19].mxu1  ;;  %699 = vrot.lane.b32.xlu0 %v680_v58, %s2158_s2  ;;  %722 = vrot.lane.b32.xlu1 %v680_v58, %s2159_s4  ;;  %v691_v0 = vadd.f32 %v687_v63, %v680_v58 }
 0x4c8   :  { %v1874_v1 = vmul.f32 -1.442695, %v691_v0 }
 0x4ca   :  { %377 = vrot.lane.b32.xlu0 %v2398_v53, %s2159_s4  ;;  %735 = vrot.lane.b32.xlu1 %v682_v62, %s2160_s0  ;;  %2024 = vpow2.f32 %v1874_v1 }
 0x4ce   :  { %724 = vrot.lane.b32.xlu0 %v682_v62, %s2159_s4 }
 0x4d4   :  { %v2025_v3 = vpop.eup %2024 }
 0x4d5   :  { %v695_v4 = vadd.f32 1.0, %v2025_v3 }
 0x4d7   :  { %2026 = vrcp.f32 %v695_v4 }
 0x4e1   :  { %v2027_v6 = vpop.eup %2026 }
 0x4e2   :  { %v709_v49 = vsub.f32 1.0, %v2027_v6 }
 0x538   :  { %v700_v8 = vpop.permute.xlu0 %699  ;;  %v723_v12 = vpop.permute.xlu1 %722 }
 0x539   :  { %v702_v7 = vmul.f32 %v2027_v6, %v700_v8 }
 0x53b   :  { %704 = vrot.lane.b32.xlu0 %v702_v7, %s2158_s2 }
 0x53c   :  { %v378_v10 = vpop.permute.xlu0 %377  ;;  %v736_v26 = vpop.permute.xlu1 %735 }
 0x53d   :  { %v389_v53 = vsel %vm240_vm11, %v376_v9, %v378_v10 }
 0x53e   :  { %406 = vst.msk [vmem:[#allocation2 + $0x70] sm:$0xff] %vm326_vm12, %v389_v53 }
 0x540   :  { %v725_v11 = vpop.permute.xlu0 %724 }
 0x541   :  { %v726_v15 = vsel %vm240_vm11, %v723_v12, %v725_v11 }
 0x545   :  { %v690_v13 = vld [vmem:[#allocation2 + $0x70] sm:$0xff] }
 0x546   :  { %v728_v17 = vadd.f32 %v726_v15, %v690_v13 }
 0x548   :  { %v1875_v18 = vmul.f32 -1.442695, %v728_v17 }
 0x54a   :  { %2028 = vpow2.f32 %v1875_v18 }
 0x554   :  { %v2029_v20 = vpop.eup %2028 }
 0x555   :  { %v732_v22 = vadd.f32 1.0, %v2029_v20 }
 0x557   :  { %2030 = vrcp.f32 %v732_v22 }
 0x561   :  { %v2031_v24 = vpop.eup %2030 }
 0x562   :  { %v738_v29 = vmul.f32 %v2031_v24, %v736_v26  ;;  %v745_v51 = vsub.f32 1.0, %v2031_v24  ;;  %v751_v58 = vmul.f32 %v2031_v24, %v2426_v57 }
 0x564   :  { %740 = vrot.lane.b32.xlu1 %v738_v29, %s2158_s2 }
 0x568   :  { %716 = vrot.lane.b32.xlu1 %v2426_v57, %s2159_s4 }
 0x5ad   :  { %v705_v27 = vpop.permute.xlu0 %704 }
 0x5ae   :  { %v707_v31 = vadd.f32 %v705_v27, %v687_v63 }
 0x5b0   :  { %2032 = vtanh.f32 %v707_v31 }
 0x5ba   :  { %v2033_v34 = vpop.eup %2032 }
 0x5bb   :  { %711 = vrot.lane.b32.xlu0 %v2033_v34, %s2160_s0 }
 0x5d6   :  { %v741_v35 = vpop.permute.xlu1 %740 }
 0x5d7   :  { %v743_v38 = vadd.f32 %v741_v35, %v690_v13 }
 0x5d9   :  { %2034 = vtanh.f32 %v743_v38 }
 0x5da   :  { %v717_v43 = vpop.permute.xlu1 %716 }
 0x5db   :  { %v719_v52 = vmul.f32 %v2027_v6, %v717_v43 }
 0x5e3   :  { %v2035_v41 = vpop.eup %2034 }
 0x5e4   :  { %747 = vrot.lane.b32.xlu0 %v2035_v41, %s2160_s0 }
 0x62d   :  { %v712_v50 = vpop.permute.xlu0 %711 }
 0x62e   :  { %v714_v55 = vmul.f32 %v712_v50, %v709_v49 }
 0x630   :  { %v720_v56 = vadd.f32 %v719_v52, %v714_v55 }
 0x632   :  { %754 = vrot.lane.b32.xlu1 %v720_v56, %s2160_s0 }
 0x636   :  { %371 = vrot.lane.b32.xlu1 %v2392_v42, %s2159_s4 }
 0x656   :  { %v748_v47 = vpop.permute.xlu0 %747 }
 0x657   :  { %v750_v59 = vmul.f32 %v748_v47, %v745_v51 }
 0x659   :  { %v752_v60 = vadd.f32 %v751_v58, %v750_v59 }
 0x65b   :  { %762 = vst.msk [vmem:[#allocation4 + $0x30] sm:$0xff] %vm587_vm13, %v752_v60 }
 0x6a4   :  { %v755_v61 = vpop.permute.xlu1 %754 }
 0x6a5   :  { %757 = vst.msk [vmem:[#allocation3] sm:$0xff] %vm240_vm11, %v755_v61  ;;  %760 = vst.msk [vmem:[#allocation4 + $0x8] sm:$0xff] %vm240_vm11, %v755_v61 }
 0x6a6   :  { %758 = vst.msk [vmem:[#allocation3] sm:$0xff] %vm587_vm13, %v752_v60 }
 0x6a8   :  { %v372_v8 = vpop.permute.xlu1 %371 }
 0x6ad   :  { %v2464_v62 = vld [vmem:[#allocation3] sm:$0xff] }
 0x6ae   :  { %v764_v42 = vpack.c.bf16 %v2464_v62, %v2464_v62 }
 0x6b0   :  { %1884 = vmatmul.mubr.msk.bf16.vlgmr.msra.gmra.mrb[12].mxu0 %vm408_vm1, %v764_v42 }
 0x6b1   :  { %1159 = vmatpush1.bf16.msra.mxu0 %v2261_v30  ;;  %1190 = vmatprep.mubr.bf16.mxu0 %v2156_v2 }
 0x6b2   :  { %1160 = vmatprep.subr.bf16.mxu0 %v2266_v33 }
 0x6b5   :  { %1161 = vmatpush1.bf16.msra.mxu0 %v2274_v37  ;;  %v858_v37 = vld [vmem:[#allocation2 + $0x10] sm:$0xff] }
 0x6b6   :  { %1162 = vmatprep.subr.bf16.mxu0 %v2280_v40 }
 0x6b9   :  { %1163 = vmatpush1.bf16.msra.mxu0 %v2287_v44 }
 0x6ba   :  { %1164 = vmatprep.subr.bf16.mxu0 %v2293_v45 }
 0x6bd   :  { %1165 = vmatpush1.bf16.msra.mxu0 %v2300_v46 }
 0x783   :  { %v850_v57 = vpop.f32.mrb[12].mxu0 }
 0x784   :  { %v851_v63 = vadd.f32 %v850_v57, %v2339_v5  ;;  %v852_v0 = vpop.f32.mrb[13].mxu0 }
 0x785   :  { %v854_v1 = vpop.f32.mrb[14].mxu0  ;;  %v853_v33 = vadd.f32 %v852_v0, %v2331_v54  ;;  %v1029_v0 = vld [vmem:[#allocation2 + $0x18] sm:$0xff] }
 0x786   :  { %v855_v30 = vpop.f32.mrb[15].mxu0  ;;  %870 = vrot.lane.b32.xlu0 %v851_v63, %s2158_s2  ;;  %893 = vrot.lane.b32.xlu1 %v851_v63, %s2159_s4  ;;  %v862_v40 = vadd.f32 %v858_v37, %v851_v63 }
 0x788   :  { %v1885_v44 = vmul.f32 -1.442695, %v862_v40 }
 0x78a   :  { %373 = vrot.lane.b32.xlu0 %v2394_v48, %s2159_s4  ;;  %906 = vrot.lane.b32.xlu1 %v853_v33, %s2160_s0  ;;  %2036 = vpow2.f32 %v1885_v44 }
 0x78e   :  { %895 = vrot.lane.b32.xlu0 %v853_v33, %s2159_s4 }
 0x794   :  { %v2037_v45 = vpop.eup %2036 }
 0x795   :  { %v866_v46 = vadd.f32 1.0, %v2037_v45 }
 0x797   :  { %2038 = vrcp.f32 %v866_v46 }
 0x7a1   :  { %v2039_v3 = vpop.eup %2038 }
 0x7a2   :  { %v880_v38 = vsub.f32 1.0, %v2039_v3 }
 0x7f8   :  { %v871_v4 = vpop.permute.xlu0 %870  ;;  %v894_v10 = vpop.permute.xlu1 %893 }
 0x7f9   :  { %v873_v6 = vmul.f32 %v2039_v3, %v871_v4 }
 0x7fb   :  { %875 = vrot.lane.b32.xlu0 %v873_v6, %s2158_s2 }
 0x7fc   :  { %v374_v7 = vpop.permute.xlu0 %373  ;;  %v907_v20 = vpop.permute.xlu1 %906 }
 0x7fd   :  { %v388_v48 = vsel %vm240_vm11, %v372_v8, %v374_v7 }
 0x7fe   :  { %405 = vst.msk [vmem:[#allocation2 + $0x68] sm:$0xff] %vm326_vm12, %v388_v48 }
 0x800   :  { %v896_v9 = vpop.permute.xlu0 %895 }
 0x801   :  { %v897_v11 = vsel %vm240_vm11, %v894_v10, %v896_v9 }
 0x805   :  { %v861_v53 = vld [vmem:[#allocation2 + $0x68] sm:$0xff] }
 0x806   :  { %v899_v12 = vadd.f32 %v897_v11, %v861_v53 }
 0x808   :  { %v1886_v13 = vmul.f32 -1.442695, %v899_v12 }
 0x80a   :  { %2040 = vpow2.f32 %v1886_v13 }
 0x814   :  { %v2041_v15 = vpop.eup %2040 }
 0x815   :  { %v903_v17 = vadd.f32 1.0, %v2041_v15 }
 0x817   :  { %2042 = vrcp.f32 %v903_v17 }
 0x821   :  { %v2043_v18 = vpop.eup %2042 }
 0x822   :  { %v909_v22 = vmul.f32 %v2043_v18, %v907_v20  ;;  %v916_v52 = vsub.f32 1.0, %v2043_v18  ;;  %v922_v56 = vmul.f32 %v2043_v18, %v2464_v62 }
 0x824   :  { %911 = vrot.lane.b32.xlu1 %v909_v22, %s2158_s2 }
 0x828   :  { %887 = vrot.lane.b32.xlu1 %v2464_v62, %s2159_s4 }
 0x86d   :  { %v876_v24 = vpop.permute.xlu0 %875 }
 0x86e   :  { %v878_v26 = vadd.f32 %v876_v24, %v858_v37 }
 0x870   :  { %2044 = vtanh.f32 %v878_v26 }
 0x87a   :  { %v2045_v29 = vpop.eup %2044 }
 0x87b   :  { %882 = vrot.lane.b32.xlu0 %v2045_v29, %s2160_s0 }
 0x896   :  { %v912_v27 = vpop.permute.xlu1 %911 }
 0x897   :  { %v914_v31 = vadd.f32 %v912_v27, %v861_v53 }
 0x899   :  { %2046 = vtanh.f32 %v914_v31 }
 0x89a   :  { %v888_v35 = vpop.permute.xlu1 %887 }
 0x89b   :  { %v890_v43 = vmul.f32 %v2039_v3, %v888_v35 }
 0x8a3   :  { %v2047_v34 = vpop.eup %2046 }
 0x8a4   :  { %918 = vrot.lane.b32.xlu0 %v2047_v34, %s2160_s0 }
 0x8ed   :  { %v883_v41 = vpop.permute.xlu0 %882 }
 0x8ee   :  { %v885_v49 = vmul.f32 %v883_v41, %v880_v38 }
 0x8f0   :  { %v891_v50 = vadd.f32 %v890_v43, %v885_v49 }
 0x8f2   :  { %925 = vrot.lane.b32.xlu1 %v891_v50, %s2160_s0 }
 0x8f6   :  { %367 = vrot.lane.b32.xlu1 %v2386_v36, %s2159_s4 }
 0x916   :  { %v919_v55 = vpop.permute.xlu0 %918 }
 0x917   :  { %v921_v51 = vmul.f32 %v919_v55, %v916_v52 }
 0x919   :  { %v923_v47 = vadd.f32 %v922_v56, %v921_v51 }
 0x91b   :  { %933 = vst.msk [vmem:[#allocation4 + $0x28] sm:$0xff] %vm587_vm13, %v923_v47 }
 0x964   :  { %v926_v58 = vpop.permute.xlu1 %925 }
 0x965   :  { %928 = vst.msk [vmem:[#allocation3] sm:$0xff] %vm240_vm11, %v926_v58  ;;  %931 = vst.msk [vmem:[#allocation4 + $0x10] sm:$0xff] %vm240_vm11, %v926_v58 }
 0x966   :  { %929 = vst.msk [vmem:[#allocation3] sm:$0xff] %vm587_vm13, %v923_v47 }
 0x968   :  { %v368_v46 = vpop.permute.xlu1 %367 }
 0x96d   :  { %v2502_v59 = vld [vmem:[#allocation3] sm:$0xff] }
 0x96e   :  { %v935_v36 = vpack.c.bf16 %v2502_v59, %v2502_v59 }
 0x970   :  { %1895 = vmatmul.mubr.msk.bf16.vlgmr.msra.gmra.mrb[20].mxu1 %vm408_vm1, %v935_v36 }
 0x971   :  { %1359 = vmatprep.mubr.bf16.mxu1 %v2156_v2 }
 0xa43   :  { %v1021_v60 = vpop.f32.mrb[20].mxu1 }
 0xa44   :  { %v1022_v61 = vadd.f32 %v1021_v60, %v2339_v5  ;;  %v1023_v62 = vpop.f32.mrb[21].mxu1  ;;  %v1200_v60 = vld [vmem:[#allocation2 + $0x20] sm:$0xff] }
 0xa45   :  { %v1025_v42 = vpop.f32.mrb[22].mxu1  ;;  %v1024_v63 = vadd.f32 %v1023_v62, %v2331_v54 }
 0xa46   :  { %v1026_v57 = vpop.f32.mrb[23].mxu1  ;;  %1041 = vrot.lane.b32.xlu0 %v1022_v61, %s2158_s2  ;;  %1064 = vrot.lane.b32.xlu1 %v1022_v61, %s2159_s4  ;;  %v1033_v1 = vadd.f32 %v1029_v0, %v1022_v61 }
 0xa48   :  { %v1896_v30 = vmul.f32 -1.442695, %v1033_v1 }
 0xa4a   :  { %369 = vrot.lane.b32.xlu0 %v2388_v39, %s2159_s4  ;;  %1077 = vrot.lane.b32.xlu1 %v1024_v63, %s2160_s0  ;;  %2048 = vpow2.f32 %v1896_v30 }
 0xa4e   :  { %1066 = vrot.lane.b32.xlu0 %v1024_v63, %s2159_s4 }
 0xa54   :  { %v2049_v33 = vpop.eup %2048 }
 0xa55   :  { %v1037_v37 = vadd.f32 1.0, %v2049_v33 }
 0xa57   :  { %2050 = vrcp.f32 %v1037_v37 }
 0xa61   :  { %v2051_v40 = vpop.eup %2050 }
 0xa62   :  { %v1051_v29 = vsub.f32 1.0, %v2051_v40 }
 0xab8   :  { %v1042_v44 = vpop.permute.xlu0 %1041  ;;  %v1065_v6 = vpop.permute.xlu1 %1064 }
 0xab9   :  { %v1044_v45 = vmul.f32 %v2051_v40, %v1042_v44 }
 0xabb   :  { %1046 = vrot.lane.b32.xlu0 %v1044_v45, %s2158_s2 }
 0xabc   :  { %v370_v3 = vpop.permute.xlu0 %369  ;;  %v1078_v12 = vpop.permute.xlu1 %1077 }
 0xabd   :  { %v387_v39 = vsel %vm240_vm11, %v368_v46, %v370_v3 }
 0xabe   :  { %404 = vst.msk [vmem:[#allocation2 + $0x60] sm:$0xff] %vm326_vm12, %v387_v39 }
 0xac0   :  { %v1067_v4 = vpop.permute.xlu0 %1066 }
 0xac1   :  { %v1068_v7 = vsel %vm240_vm11, %v1065_v6, %v1067_v4 }
 0xac5   :  { %v1032_v8 = vld [vmem:[#allocation2 + $0x60] sm:$0xff] }
 0xac6   :  { %v1070_v48 = vadd.f32 %v1068_v7, %v1032_v8 }
 0xac8   :  { %v1897_v9 = vmul.f32 -1.442695, %v1070_v48 }
 0xaca   :  { %2052 = vpow2.f32 %v1897_v9 }
 0xad4   :  { %v2053_v10 = vpop.eup %2052 }
 0xad5   :  { %v1074_v53 = vadd.f32 1.0, %v2053_v10 }
 0xad7   :  { %2054 = vrcp.f32 %v1074_v53 }
 0xae1   :  { %v2055_v11 = vpop.eup %2054 }
 0xae2   :  { %v1080_v13 = vmul.f32 %v2055_v11, %v1078_v12  ;;  %v1087_v38 = vsub.f32 1.0, %v2055_v11  ;;  %v1093_v43 = vmul.f32 %v2055_v11, %v2502_v59  ;;  %v2000_v12 = vld [vmem:[%s2707_s3] ss:$8 sps:$4 sm:$0xff]  }
 0xae4   :  { %1082 = vrot.lane.b32.xlu1 %v1080_v13, %s2158_s2  ;;  %v2002_v13 = vld [vmem:[%s2707_s3 + $0x4] ss:$8 sps:$4 sm:$0xff]  }
 0xae5   :  { %1327 = vmatprep.subr.bf16.mxu1 %v2002_v13  ;;  %1496 = vmatprep.subr.bf16.mxu0 %v2002_v13 }
 0xae6   :  { %1328 = vmatpush1.bf16.msra.mxu1 %v2000_v12 }
 0xae8   :  { %1058 = vrot.lane.b32.xlu1 %v2502_v59, %s2159_s4 }
 0xb2d   :  { %v1047_v15 = vpop.permute.xlu0 %1046 }
 0xb2e   :  { %v1049_v17 = vadd.f32 %v1047_v15, %v1029_v0  ;;  %v2005_v15 = vld [vmem:[%s2707_s3 + $0x14] ss:$8 sps:$4 sm:$0xff]  }
 0xb2f   :  { %1329 = vmatprep.subr.bf16.mxu1 %v2005_v15 }
 0xb30   :  { %2056 = vtanh.f32 %v1049_v17  ;;  %v2003_v17 = vld [vmem:[%s2707_s3 + $0x10] ss:$8 sps:$4 sm:$0xff]  }
 0xb31   :  { %1330 = vmatpush1.bf16.msra.mxu1 %v2003_v17 }
 0xb3a   :  { %v2057_v18 = vpop.eup %2056 }
 0xb3b   :  { %1053 = vrot.lane.b32.xlu0 %v2057_v18, %s2160_s0 }
 0xb56   :  { %v1083_v20 = vpop.permute.xlu1 %1082 }
 0xb57   :  { %v1085_v22 = vadd.f32 %v1083_v20, %v1032_v8  ;;  %v2006_v20 = vld [vmem:[%s2707_s3 + $0x20] ss:$8 sps:$4 sm:$0xff]  }
 0xb59   :  { %2058 = vtanh.f32 %v1085_v22  ;;  %v2008_v22 = vld [vmem:[%s2707_s3 + $0x24] ss:$8 sps:$4 sm:$0xff]  }
 0xb5a   :  { %v1059_v26 = vpop.permute.xlu1 %1058  ;;  %1331 = vmatprep.subr.bf16.mxu1 %v2008_v22 }
 0xb5b   :  { %v1061_v31 = vmul.f32 %v2051_v40, %v1059_v26  ;;  %1332 = vmatpush1.bf16.msra.mxu1 %v2006_v20  ;;  %v2009_v26 = vld [vmem:[%s2707_s3 + $0x30] ss:$8 sps:$4 sm:$0xff]  }
 0xb63   :  { %v2059_v24 = vpop.eup %2058 }
 0xb64   :  { %1089 = vrot.lane.b32.xlu0 %v2059_v24, %s2160_s0  ;;  %v2011_v24 = vld [vmem:[%s2707_s3 + $0x34] ss:$8 sps:$4 sm:$0xff]   ;;  %s2161_s3 = smov [#allocation4]  }
 0xb65   :  { %1333 = vmatprep.subr.bf16.mxu1 %v2011_v24  ;;  %s1795_s19 = sshll.u32 %s2161_s3, 4  ;;  %s1796_s19 = int_to_ptr.vmem [resolvable:$true] %s1795_s19 }
 0xb66   :  { %1334 = vmatpush1.bf16.msra.mxu1 %v2009_v26  ;;  %s2108_s20 = scalar_lea.vmem %s1796_s19, 1024  ;;  %p2113_p1 = scmp.lt.s32.totalorder %s1796_s19, %s1796_s19 }
 0xb67   :  { %1665 = vmatprep.subr.bf16.mxu1 %v2002_v13  ;;  %p2109_p0 = scmp.ne.s32.totalorder %s1796_s19, %s2108_s20  ;;  %p2114_p2 = scmp.lt.s32.totalorder %s2108_s20, %s2108_s20 }
 0xb69   :  { %p2115_p3 = por %p2114_p2, %p2113_p1 }
 0xb6b   :  { %p2116_p4 = pnand %p2115_p3, %p2109_p0 }
 0xbad   :  { %v1054_v27 = vpop.permute.xlu0 %1053 }
 0xbae   :  { %v1056_v34 = vmul.f32 %v1054_v27, %v1051_v29 }
 0xbb0   :  { %v1062_v35 = vadd.f32 %v1061_v31, %v1056_v34 }
 0xbb2   :  { %1096 = vrot.lane.b32.xlu1 %v1062_v35, %s2160_s0 }
 0xbb6   :  { %363 = vrot.lane.b32.xlu1 %v2379_v28, %s2159_s4 }
 0xbd6   :  { %v1090_v41 = vpop.permute.xlu0 %1089 }
 0xbd7   :  { %v1092_v49 = vmul.f32 %v1090_v41, %v1087_v38 }
 0xbd9   :  { %v1094_v50 = vadd.f32 %v1093_v43, %v1092_v49 }
 0xbdb   :  { %1104 = vst.msk [vmem:[#allocation4 + $0x20] sm:$0xff] %vm587_vm13, %v1094_v50 }
 0xc24   :  { %v1097_v52 = vpop.permute.xlu1 %1096 }
 0xc25   :  { %1099 = vst.msk [vmem:[#allocation3] sm:$0xff] %vm240_vm11, %v1097_v52  ;;  %1102 = vst.msk [vmem:[#allocation4 + $0x18] sm:$0xff] %vm240_vm11, %v1097_v52 }
 0xc26   :  { %1100 = vst.msk [vmem:[#allocation3] sm:$0xff] %vm587_vm13, %v1094_v50 }
 0xc28   :  { %v364_v30 = vpop.permute.xlu1 %363 }
 0xc2d   :  { %v2533_v55 = vld [vmem:[#allocation3] sm:$0xff] }
 0xc2e   :  { %v1106_v28 = vpack.c.bf16 %v2533_v55, %v2533_v55 }
 0xc30   :  { %1906 = vmatmul.mubr.msk.bf16.vlgmr.msra.gmra.mrb[16].mxu0 %vm408_vm1, %v1106_v28 }
 0xc31   :  { %1528 = vmatprep.mubr.bf16.mxu0 %v2156_v2  ;;  %1497 = vmatpush1.bf16.msra.mxu0 %v2000_v12 }
 0xc32   :  { %1498 = vmatprep.subr.bf16.mxu0 %v2005_v15 }
 0xc35   :  { %1499 = vmatpush1.bf16.msra.mxu0 %v2003_v17 }
 0xc36   :  { %1500 = vmatprep.subr.bf16.mxu0 %v2008_v22 }
 0xc39   :  { %1501 = vmatpush1.bf16.msra.mxu0 %v2006_v20 }
 0xc3a   :  { %1502 = vmatprep.subr.bf16.mxu0 %v2011_v24 }
 0xc3d   :  { %1503 = vmatpush1.bf16.msra.mxu0 %v2009_v26 }
 0xd03   :  { %v1192_v56 = vpop.f32.mrb[16].mxu0 }
 0xd04   :  { %v1193_v51 = vadd.f32 %v1192_v56, %v2339_v5  ;;  %v1194_v47 = vpop.f32.mrb[17].mxu0 }
 0xd05   :  { %v1196_v58 = vpop.f32.mrb[18].mxu0  ;;  %v1195_v36 = vadd.f32 %v1194_v47, %v2331_v54 }
 0xd06   :  { %v1197_v59 = vpop.f32.mrb[19].mxu0  ;;  %1235 = vrot.lane.b32.xlu1 %v1193_v51, %s2159_s4  ;;  %1212 = vrot.lane.b32.xlu0 %v1193_v51, %s2158_s2  ;;  %v1204_v61 = vadd.f32 %v1200_v60, %v1193_v51 }
 0xd08   :  { %v1907_v62 = vmul.f32 -1.442695, %v1204_v61 }
 0xd0a   :  { %1248 = vrot.lane.b32.xlu1 %v1195_v36, %s2160_s0  ;;  %365 = vrot.lane.b32.xlu0 %v2382_v32, %s2159_s4  ;;  %2060 = vpow2.f32 %v1907_v62 }
 0xd0e   :  { %1237 = vrot.lane.b32.xlu0 %v1195_v36, %s2159_s4 }
 0xd14   :  { %v2061_v42 = vpop.eup %2060 }
 0xd15   :  { %v1208_v57 = vadd.f32 1.0, %v2061_v42 }
 0xd17   :  { %2062 = vrcp.f32 %v1208_v57 }
 0xd21   :  { %v2063_v63 = vpop.eup %2062 }
 0xd22   :  { %v1222_v27 = vsub.f32 1.0, %v2063_v63 }
 0xd78   :  { %v1213_v0 = vpop.permute.xlu0 %1212  ;;  %v1236_v40 = vpop.permute.xlu1 %1235 }
 0xd79   :  { %v1215_v1 = vmul.f32 %v2063_v63, %v1213_v0 }
 0xd7b   :  { %1217 = vrot.lane.b32.xlu0 %v1215_v1, %s2158_s2 }
 0xd7c   :  { %v366_v33 = vpop.permute.xlu0 %365  ;;  %v1249_v8 = vpop.permute.xlu1 %1248 }
 0xd7d   :  { %v386_v37 = vsel %vm240_vm11, %v364_v30, %v366_v33 }
 0xd7e   :  { %403 = vst.msk [vmem:[#allocation2 + $0x58] sm:$0xff] %vm326_vm12, %v386_v37 }
 0xd80   :  { %v1238_v32 = vpop.permute.xlu0 %1237 }
 0xd81   :  { %v1239_v45 = vsel %vm240_vm11, %v1236_v40, %v1238_v32 }
 0xd85   :  { %v1203_v44 = vld [vmem:[#allocation2 + $0x58] sm:$0xff] }
 0xd86   :  { %v1241_v46 = vadd.f32 %v1239_v45, %v1203_v44 }
 0xd88   :  { %v1908_v3 = vmul.f32 -1.442695, %v1241_v46 }
 0xd8a   :  { %2064 = vpow2.f32 %v1908_v3 }
 0xd94   :  { %v2065_v39 = vpop.eup %2064 }
 0xd95   :  { %v1245_v4 = vadd.f32 1.0, %v2065_v39 }
 0xd97   :  { %2066 = vrcp.f32 %v1245_v4 }
 0xda1   :  { %v2067_v6 = vpop.eup %2066 }
 0xda2   :  { %v1251_v7 = vmul.f32 %v2067_v6, %v1249_v8  ;;  %v1258_v41 = vsub.f32 1.0, %v2067_v6  ;;  %v1264_v49 = vmul.f32 %v2067_v6, %v2533_v55 }
 0xda4   :  { %1253 = vrot.lane.b32.xlu1 %v1251_v7, %s2158_s2 }
 0xda8   :  { %1229 = vrot.lane.b32.xlu1 %v2533_v55, %s2159_s4 }
 0xded   :  { %v1218_v48 = vpop.permute.xlu0 %1217 }
 0xdee   :  { %v1220_v9 = vadd.f32 %v1218_v48, %v1200_v60 }
 0xdf0   :  { %2068 = vtanh.f32 %v1220_v9 }
 0xdfa   :  { %v2069_v10 = vpop.eup %2068 }
 0xdfb   :  { %1224 = vrot.lane.b32.xlu0 %v2069_v10, %s2160_s0 }
 0xe16   :  { %v1254_v53 = vpop.permute.xlu1 %1253 }
 0xe17   :  { %v1256_v11 = vadd.f32 %v1254_v53, %v1203_v44 }
 0xe19   :  { %2070 = vtanh.f32 %v1256_v11 }
 0xe1a   :  { %v1230_v29 = vpop.permute.xlu1 %1229 }
 0xe1b   :  { %v1232_v34 = vmul.f32 %v2063_v63, %v1230_v29 }
 0xe23   :  { %v2071_v18 = vpop.eup %2070 }
 0xe24   :  { %1260 = vrot.lane.b32.xlu0 %v2071_v18, %s2160_s0 }
 0xe6d   :  { %v1225_v31 = vpop.permute.xlu0 %1224 }
 0xe6e   :  { %v1227_v35 = vmul.f32 %v1225_v31, %v1222_v27 }
 0xe70   :  { %v1233_v38 = vadd.f32 %v1232_v34, %v1227_v35 }
 0xe72   :  { %1267 = vrot.lane.b32.xlu1 %v1233_v38, %s2160_s0 }
 0xe76   :  { %359 = vrot.lane.b32.xlu1 %v2373_v23, %s2159_s4 }
 0xe96   :  { %v1261_v43 = vpop.permute.xlu0 %1260 }
 0xe97   :  { %v1263_v50 = vmul.f32 %v1261_v43, %v1258_v41 }
 0xe99   :  { %v1265_v52 = vadd.f32 %v1264_v49, %v1263_v50  ;;  %v1538_v50 = vld [vmem:[#allocation2 + $0x30] sm:$0xff] }
 0xe9b   :  { %1273 = vst.msk [vmem:[#allocation4 + $0x18] sm:$0xff] %vm587_vm13, %v1265_v52 }
 0xee4   :  { %v1268_v28 = vpop.permute.xlu1 %1267 }
 0xee5   :  { %1270 = vst.msk [vmem:[#allocation3] sm:$0xff] %vm240_vm11, %v1268_v28  ;;  %1272 = vst.msk [vmem:[#allocation4 + $0x20] sm:$0xff] %vm240_vm11, %v1268_v28 }
 0xee6   :  { %1271 = vst.msk [vmem:[#allocation3] sm:$0xff] %vm587_vm13, %v1265_v52 }
 0xee8   :  { %v360_v1 = vpop.permute.xlu1 %359 }
 0xeed   :  { %v2588_v56 = vld [vmem:[#allocation3] sm:$0xff] }
 0xeee   :  { %v1275_v23 = vpack.c.bf16 %v2588_v56, %v2588_v56 }
 0xef0   :  { %1917 = vmatmul.mubr.msk.bf16.vlgmr.msra.gmra.mrb[24].mxu1 %vm408_vm1, %v1275_v23 }
 0xef1   :  { %1666 = vmatpush1.bf16.msra.mxu1 %v2000_v12  ;;  %1697 = vmatprep.mubr.bf16.mxu1 %v2156_v2  ;;  %v1369_v2 = vld [vmem:[#allocation2 + $0x28] sm:$0xff] }
 0xef2   :  { %1667 = vmatprep.subr.bf16.mxu1 %v2005_v15 }
 0xef5   :  { %1668 = vmatpush1.bf16.msra.mxu1 %v2003_v17 }
 0xef6   :  { %1669 = vmatprep.subr.bf16.mxu1 %v2008_v22 }
 0xef9   :  { %1670 = vmatpush1.bf16.msra.mxu1 %v2006_v20 }
 0xefa   :  { %1671 = vmatprep.subr.bf16.mxu1 %v2011_v24 }
 0xefd   :  { %1672 = vmatpush1.bf16.msra.mxu1 %v2009_v26 }
 0xfc3   :  { %v1361_v55 = vpop.f32.mrb[24].mxu1 }
 0xfc4   :  { %v1362_v51 = vadd.f32 %v1361_v55, %v2339_v5  ;;  %v1363_v47 = vpop.f32.mrb[25].mxu1 }
 0xfc5   :  { %v1365_v58 = vpop.f32.mrb[26].mxu1  ;;  %v1364_v36 = vadd.f32 %v1363_v47, %v2331_v54 }
 0xfc6   :  { %v1366_v59 = vpop.f32.mrb[27].mxu1  ;;  %1404 = vrot.lane.b32.xlu1 %v1362_v51, %s2159_s4  ;;  %1381 = vrot.lane.b32.xlu0 %v1362_v51, %s2158_s2  ;;  %v1373_v60 = vadd.f32 %v1369_v2, %v1362_v51 }
 0xfc8   :  { %v1918_v61 = vmul.f32 -1.442695, %v1373_v60 }
 0xfca   :  { %1417 = vrot.lane.b32.xlu1 %v1364_v36, %s2160_s0  ;;  %361 = vrot.lane.b32.xlu0 %v2375_v25, %s2159_s4  ;;  %2072 = vpow2.f32 %v1918_v61 }
 0xfce   :  { %1406 = vrot.lane.b32.xlu0 %v1364_v36, %s2159_s4 }
 0xfd4   :  { %v2073_v62 = vpop.eup %2072 }
 0xfd5   :  { %v1377_v42 = vadd.f32 1.0, %v2073_v62 }
 0xfd7   :  { %2074 = vrcp.f32 %v1377_v42 }
 0xfe1   :  { %v2075_v57 = vpop.eup %2074 }
 0xfe2   :  { %v1391_v12 = vsub.f32 1.0, %v2075_v57 }
0x1038   :  { %v1382_v63 = vpop.permute.xlu0 %1381  ;;  %v1405_v37 = vpop.permute.xlu1 %1404 }
0x1039   :  { %v1384_v0 = vmul.f32 %v2075_v57, %v1382_v63 }
0x103b   :  { %1386 = vrot.lane.b32.xlu0 %v1384_v0, %s2158_s2 }
0x103c   :  { %v362_v30 = vpop.permute.xlu0 %361  ;;  %v1418_v4 = vpop.permute.xlu1 %1417 }
0x103d   :  { %v385_v33 = vsel %vm240_vm11, %v360_v1, %v362_v30 }
0x103e   :  { %402 = vst.msk [vmem:[#allocation2 + $0x50] sm:$0xff] %vm326_vm12, %v385_v33 }
0x1040   :  { %v1407_v25 = vpop.permute.xlu0 %1406 }
0x1041   :  { %v1408_v40 = vsel %vm240_vm11, %v1405_v37, %v1407_v25 }
0x1045   :  { %v1372_v32 = vld [vmem:[#allocation2 + $0x50] sm:$0xff] }
0x1046   :  { %v1410_v44 = vadd.f32 %v1408_v40, %v1372_v32 }
0x1048   :  { %v1919_v45 = vmul.f32 -1.442695, %v1410_v44 }
0x104a   :  { %2076 = vpow2.f32 %v1919_v45 }
0x1054   :  { %v2077_v46 = vpop.eup %2076 }
0x1055   :  { %v1414_v3 = vadd.f32 1.0, %v2077_v46 }
0x1057   :  { %2078 = vrcp.f32 %v1414_v3 }
0x1061   :  { %v2079_v39 = vpop.eup %2078 }
0x1062   :  { %v1420_v6 = vmul.f32 %v2079_v39, %v1418_v4  ;;  %v1427_v20 = vsub.f32 1.0, %v2079_v39  ;;  %v1433_v24 = vmul.f32 %v2079_v39, %v2588_v56 }
0x1064   :  { %1422 = vrot.lane.b32.xlu1 %v1420_v6, %s2158_s2 }
0x1068   :  { %1398 = vrot.lane.b32.xlu1 %v2588_v56, %s2159_s4 }
0x10ad   :  { %v1387_v8 = vpop.permute.xlu0 %1386 }
0x10ae   :  { %v1389_v7 = vadd.f32 %v1387_v8, %v1369_v2 }
0x10b0   :  { %2080 = vtanh.f32 %v1389_v7 }
0x10ba   :  { %v2081_v48 = vpop.eup %2080 }
0x10bb   :  { %1393 = vrot.lane.b32.xlu0 %v2081_v48, %s2160_s0 }
0x10d6   :  { %v1423_v9 = vpop.permute.xlu1 %1422 }
0x10d7   :  { %v1425_v10 = vadd.f32 %v1423_v9, %v1372_v32 }
0x10d9   :  { %2082 = vtanh.f32 %v1425_v10 }
0x10da   :  { %v1399_v11 = vpop.permute.xlu1 %1398 }
0x10db   :  { %v1401_v15 = vmul.f32 %v2075_v57, %v1399_v11 }
0x10e3   :  { %v2083_v53 = vpop.eup %2082 }
0x10e4   :  { %1429 = vrot.lane.b32.xlu0 %v2083_v53, %s2160_s0 }
0x112d   :  { %v1394_v13 = vpop.permute.xlu0 %1393 }
0x112e   :  { %v1396_v17 = vmul.f32 %v1394_v13, %v1391_v12 }
0x1130   :  { %v1402_v18 = vadd.f32 %v1401_v15, %v1396_v17 }
0x1132   :  { %1436 = vrot.lane.b32.xlu1 %v1402_v18, %s2160_s0 }
0x1136   :  { %355 = vrot.lane.b32.xlu1 %v2367_v19, %s2159_s4 }
0x1156   :  { %v1430_v22 = vpop.permute.xlu0 %1429 }
0x1157   :  { %v1432_v26 = vmul.f32 %v1430_v22, %v1427_v20  ;;  %v1707_v22 = vld [vmem:[#allocation2 + $0x38] sm:$0xff] }
0x1159   :  { %v1434_v29 = vadd.f32 %v1433_v24, %v1432_v26 }
0x115b   :  { %1442 = vst.msk [vmem:[#allocation4 + $0x10] sm:$0xff] %vm587_vm13, %v1434_v29 }
0x11a4   :  { %v1437_v27 = vpop.permute.xlu1 %1436 }
0x11a5   :  { %1439 = vst.msk [vmem:[#allocation3] sm:$0xff] %vm240_vm11, %v1437_v27  ;;  %1441 = vst.msk [vmem:[#allocation4 + $0x28] sm:$0xff] %vm240_vm11, %v1437_v27 }
0x11a6   :  { %1440 = vst.msk [vmem:[#allocation3] sm:$0xff] %vm587_vm13, %v1434_v29 }
0x11a8   :  { %v356_v58 = vpop.permute.xlu1 %355 }
0x11ad   :  { %v2619_v31 = vld [vmem:[#allocation3] sm:$0xff] }
0x11ae   :  { %v1444_v19 = vpack.c.bf16 %v2619_v31, %v2619_v31 }
0x11b0   :  { %1928 = vmatmul.mubr.msk.bf16.vlgmr.msra.gmra.mrb[20].mxu0 %vm408_vm1, %v1444_v19 }
0x1283   :  { %v1530_v34 = vpop.f32.mrb[20].mxu0 }
0x1284   :  { %v1531_v35 = vadd.f32 %v1530_v34, %v2339_v5  ;;  %v1532_v38 = vpop.f32.mrb[21].mxu0 }
0x1285   :  { %v1534_v41 = vpop.f32.mrb[22].mxu0  ;;  %v1533_v49 = vadd.f32 %v1532_v38, %v2331_v54 }
0x1286   :  { %v1535_v43 = vpop.f32.mrb[23].mxu0  ;;  %1573 = vrot.lane.b32.xlu1 %v1531_v35, %s2159_s4  ;;  %1550 = vrot.lane.b32.xlu0 %v1531_v35, %s2158_s2  ;;  %v1542_v52 = vadd.f32 %v1538_v50, %v1531_v35 }
0x1288   :  { %v1929_v28 = vmul.f32 -1.442695, %v1542_v52 }
0x128a   :  { %1586 = vrot.lane.b32.xlu1 %v1533_v49, %s2160_s0  ;;  %357 = vrot.lane.b32.xlu0 %v2369_v21, %s2159_s4  ;;  %2084 = vpow2.f32 %v1929_v28 }
0x128e   :  { %1575 = vrot.lane.b32.xlu0 %v1533_v49, %s2159_s4 }
0x1294   :  { %v2085_v56 = vpop.eup %2084 }
0x1295   :  { %v1546_v23 = vadd.f32 1.0, %v2085_v56 }
0x1297   :  { %2086 = vrcp.f32 %v1546_v23 }
0x12a1   :  { %v2087_v55 = vpop.eup %2086 }
0x12a2   :  { %v1560_v46 = vsub.f32 1.0, %v2087_v55 }
0x12f8   :  { %v1551_v51 = vpop.permute.xlu0 %1550  ;;  %v1574_v2 = vpop.permute.xlu1 %1573 }
0x12f9   :  { %v1553_v47 = vmul.f32 %v2087_v55, %v1551_v51 }
0x12fb   :  { %1555 = vrot.lane.b32.xlu0 %v1553_v47, %s2158_s2 }
0x12fc   :  { %v358_v59 = vpop.permute.xlu0 %357  ;;  %v1587_v1 = vpop.permute.xlu1 %1586 }
0x12fd   :  { %v384_v36 = vsel %vm240_vm11, %v356_v58, %v358_v59 }
0x12fe   :  { %401 = vst.msk [vmem:[#allocation2 + $0x48] sm:$0xff] %vm326_vm12, %v384_v36 }
0x1300   :  { %v1576_v21 = vpop.permute.xlu0 %1575 }
0x1301   :  { %v1577_v61 = vsel %vm240_vm11, %v1574_v2, %v1576_v21 }
0x1305   :  { %v1541_v60 = vld [vmem:[#allocation2 + $0x48] sm:$0xff] }
0x1306   :  { %v1579_v62 = vadd.f32 %v1577_v61, %v1541_v60 }
0x1308   :  { %v1930_v42 = vmul.f32 -1.442695, %v1579_v62 }
0x130a   :  { %2088 = vpow2.f32 %v1930_v42 }
0x1314   :  { %v2089_v57 = vpop.eup %2088 }
0x1315   :  { %v1583_v63 = vadd.f32 1.0, %v2089_v57 }
0x1317   :  { %2090 = vrcp.f32 %v1583_v63 }
0x1321   :  { %v2091_v0 = vpop.eup %2090 }
0x1322   :  { %v1589_v30 = vmul.f32 %v2091_v0, %v1587_v1  ;;  %v1596_v8 = vsub.f32 1.0, %v2091_v0  ;;  %v1602_v48 = vmul.f32 %v2091_v0, %v2619_v31 }
0x1324   :  { %1591 = vrot.lane.b32.xlu1 %v1589_v30, %s2158_s2 }
0x1328   :  { %1567 = vrot.lane.b32.xlu1 %v2619_v31, %s2159_s4 }
0x136d   :  { %v1556_v33 = vpop.permute.xlu0 %1555 }
0x136e   :  { %v1558_v25 = vadd.f32 %v1556_v33, %v1538_v50 }
0x1370   :  { %2092 = vtanh.f32 %v1558_v25 }
0x137a   :  { %v2093_v37 = vpop.eup %2092 }
0x137b   :  { %1562 = vrot.lane.b32.xlu0 %v2093_v37, %s2160_s0 }
0x1396   :  { %v1592_v32 = vpop.permute.xlu1 %1591 }
0x1397   :  { %v1594_v40 = vadd.f32 %v1592_v32, %v1541_v60 }
0x1399   :  { %2094 = vtanh.f32 %v1594_v40 }
0x139a   :  { %v1568_v45 = vpop.permute.xlu1 %1567 }
0x139b   :  { %v1570_v39 = vmul.f32 %v2087_v55, %v1568_v45 }
0x13a3   :  { %v2095_v44 = vpop.eup %2094 }
0x13a4   :  { %1598 = vrot.lane.b32.xlu0 %v2095_v44, %s2160_s0 }
0x13ed   :  { %v1563_v3 = vpop.permute.xlu0 %1562 }
0x13ee   :  { %v1565_v4 = vmul.f32 %v1563_v3, %v1560_v46 }
0x13f0   :  { %v1571_v6 = vadd.f32 %v1570_v39, %v1565_v4 }
0x13f2   :  { %1605 = vrot.lane.b32.xlu1 %v1571_v6, %s2160_s0 }
0x13f6   :  { %351 = vrot.lane.b32.xlu1 %v2361_v16, %s2159_s4 }
0x1416   :  { %v1599_v7 = vpop.permute.xlu0 %1598 }
0x1417   :  { %v1601_v9 = vmul.f32 %v1599_v7, %v1596_v8 }
0x1419   :  { %v1603_v10 = vadd.f32 %v1602_v48, %v1601_v9 }
0x141b   :  { %1611 = vst.msk [vmem:[#allocation4 + $0x8] sm:$0xff] %vm587_vm13, %v1603_v10 }
0x1464   :  { %v1606_v53 = vpop.permute.xlu1 %1605 }
0x1465   :  { %1608 = vst.msk [vmem:[#allocation3] sm:$0xff] %vm240_vm11, %v1606_v53  ;;  %1610 = vst.msk [vmem:[#allocation4 + $0x30] sm:$0xff] %vm240_vm11, %v1606_v53 }
0x1466   :  { %1609 = vst.msk [vmem:[#allocation3] sm:$0xff] %vm587_vm13, %v1603_v10 }
0x146d   :  { %v2649_v11 = vld [vmem:[#allocation3] sm:$0xff] }
0x146e   :  { %v1613_v16 = vpack.c.bf16 %v2649_v11, %v2649_v11 }
0x1470   :  { %1939 = vmatmul.mubr.msk.bf16.vlgmr.msra.gmra.mrb[28].mxu1 %vm408_vm1, %v1613_v16 }
0x1543   :  { %v1699_v12 = vpop.f32.mrb[28].mxu1 }
0x1544   :  { %v1700_v13 = vadd.f32 %v1699_v12, %v2339_v5  ;;  %v1701_v15 = vpop.f32.mrb[29].mxu1 }
0x1545   :  { %v1703_v17 = vpop.f32.mrb[30].mxu1  ;;  %v1702_v20 = vadd.f32 %v1701_v15, %v2331_v54  ;;  %v352_v54 = vpop.permute.xlu1 %351 }
0x1546   :  { %v1704_v18 = vpop.f32.mrb[31].mxu1  ;;  %1742 = vrot.lane.b32.xlu1 %v1700_v13, %s2159_s4  ;;  %1719 = vrot.lane.b32.xlu0 %v1700_v13, %s2158_s2  ;;  %v1711_v24 = vadd.f32 %v1707_v22, %v1700_v13 }
0x1548   :  { %v1940_v26 = vmul.f32 -1.442695, %v1711_v24 }
0x154a   :  { %1755 = vrot.lane.b32.xlu1 %v1702_v20, %s2160_s0  ;;  %353 = vrot.lane.b32.xlu0 %v2363_v14, %s2159_s4  ;;  %2096 = vpow2.f32 %v1940_v26 }
0x154e   :  { %1744 = vrot.lane.b32.xlu0 %v1702_v20, %s2159_s4 }
0x1554   :  { %v2097_v5 = vpop.eup %2096 }
0x1555   :  { %v1715_v29 = vadd.f32 1.0, %v2097_v5 }
0x1557   :  { %2098 = vrcp.f32 %v1715_v29 }
0x1561   :  { %v2099_v27 = vpop.eup %2098 }
0x1562   :  { %v1729_v60 = vsub.f32 1.0, %v2099_v27 }
0x15b8   :  { %v1720_v31 = vpop.permute.xlu0 %1719  ;;  %v1743_v38 = vpop.permute.xlu1 %1742 }
0x15b9   :  { %v1722_v19 = vmul.f32 %v2099_v27, %v1720_v31 }
0x15bb   :  { %1724 = vrot.lane.b32.xlu0 %v1722_v19, %s2158_s2 }
0x15bc   :  { %v354_v34 = vpop.permute.xlu0 %353  ;;  %v1756_v23 = vpop.permute.xlu1 %1755 }
0x15bd   :  { %v383_v35 = vsel %vm240_vm11, %v352_v54, %v354_v34 }
0x15be   :  { %400 = vst.msk [vmem:[#allocation2 + $0x40] sm:$0xff] %vm326_vm12, %v383_v35 }
0x15c0   :  { %v1745_v14 = vpop.permute.xlu0 %1744 }
0x15c1   :  { %v1746_v43 = vsel %vm240_vm11, %v1743_v38, %v1745_v14 }
0x15c5   :  { %v1710_v41 = vld [vmem:[#allocation2 + $0x40] sm:$0xff] }
0x15c6   :  { %v1748_v49 = vadd.f32 %v1746_v43, %v1710_v41 }
0x15c8   :  { %v1941_v50 = vmul.f32 -1.442695, %v1748_v49 }
0x15ca   :  { %2100 = vpow2.f32 %v1941_v50 }
0x15d4   :  { %v2101_v52 = vpop.eup %2100 }
0x15d5   :  { %v1752_v28 = vadd.f32 1.0, %v2101_v52 }
0x15d7   :  { %2102 = vrcp.f32 %v1752_v28 }
0x15e1   :  { %v2103_v56 = vpop.eup %2102 }
0x15e2   :  { %v1758_v55 = vmul.f32 %v2103_v56, %v1756_v23  ;;  %v1765_v63 = vsub.f32 1.0, %v2103_v56  ;;  %v1771_v1 = vmul.f32 %v2103_v56, %v2649_v11 }
0x15e4   :  { %1760 = vrot.lane.b32.xlu1 %v1758_v55, %s2158_s2 }
0x15e8   :  { %1736 = vrot.lane.b32.xlu1 %v2649_v11, %s2159_s4 }
0x162d   :  { %v1725_v51 = vpop.permute.xlu0 %1724 }
0x162e   :  { %v1727_v47 = vadd.f32 %v1725_v51, %v1707_v22 }
0x1630   :  { %2104 = vtanh.f32 %v1727_v47 }
0x163a   :  { %v2105_v58 = vpop.eup %2104 }
0x163b   :  { %1731 = vrot.lane.b32.xlu0 %v2105_v58, %s2160_s0 }
0x1656   :  { %v1761_v59 = vpop.permute.xlu1 %1760 }
0x1657   :  { %v1763_v36 = vadd.f32 %v1761_v59, %v1710_v41 }
0x1659   :  { %2106 = vtanh.f32 %v1763_v36 }
0x165a   :  { %v1737_v2 = vpop.permute.xlu1 %1736 }
0x165b   :  { %v1739_v62 = vmul.f32 %v2099_v27, %v1737_v2 }
0x1663   :  { %v2107_v21 = vpop.eup %2106 }
0x1664   :  { %1767 = vrot.lane.b32.xlu0 %v2107_v21, %s2160_s0 }
0x16ad   :  { %v1732_v61 = vpop.permute.xlu0 %1731 }
0x16ae   :  { %v1734_v42 = vmul.f32 %v1732_v61, %v1729_v60 }
0x16b0   :  { %v1740_v57 = vadd.f32 %v1739_v62, %v1734_v42 }
0x16b2   :  { %1774 = vrot.lane.b32.xlu1 %v1740_v57, %s2160_s0 }
0x16d6   :  { %v1768_v0 = vpop.permute.xlu0 %1767 }
0x16d7   :  { %v1770_v30 = vmul.f32 %v1768_v0, %v1765_v63 }
0x16d9   :  { %v1772_v33 = vadd.f32 %v1771_v1, %v1770_v30 }
0x16db   :  { %1780 = vst.msk [vmem:[#allocation4] sm:$0xff] %vm587_vm13, %v1772_v33 }
0x1724   :  { %v1775_v25 = vpop.permute.xlu1 %1774 }
0x1725   :  { %1777 = vst.msk [vmem:[#allocation3] sm:$0xff] %vm240_vm11, %v1775_v25  ;;  %1779 = vst.msk [vmem:[#allocation4 + $0x38] sm:$0xff] %vm240_vm11, %v1775_v25 }
0x1726   :  { %1778 = vst.msk [vmem:[#allocation3] sm:$0xff] %vm587_vm13, %v1772_v33 }
0x1727   :  { %2119 = shalt.err (!%p2116_p4)
}
0x1728   :  { %s2120_s23 = scalar_lea.hbm %s2710_s6, 1024 }
0x1729   :  { %p2121_p5 = scmp.ne.s32.totalorder %s2710_s6, %s2120_s23  ;;  %p2124_p6 = scmp.lt.u32.totalorder %s2120_s23, %s2710_s6 }
0x172b   :  { %p2126_p7 = pnand %p2124_p6, %p2121_p5 }
0x172d   :  { %2129 = shalt.err (!%p2126_p7)
}
0x172e   :  { %s2162_s26 = smov 128   ;;  %s2163_s4 = smov 8   ;;  %v1783_v37 = vld [vmem:[#allocation3] sm:$0xff] }
0x172f   :  { %1801 = dma.vmem_to_hbm [thread:$0]  %s1796_s19, 1024, %s2710_s6, [#allocation5], %s2162_s26, %s2162_s26, %s2163_s4   ;;  %1782 = vst.msk [vmem:[#allocation6] sm:$0xff] %vm240_vm11, %v1783_v37 }
0x1730   :  { %1785 = vrot.lane.b32.xlu0 %v1783_v37, %s2160_s0  ;;  %s2164_s28 = smov [#allocation6]  }
0x1731   :  { %s1807_s29 = sshll.u32 %s2164_s28, 4  ;;  %s1808_s29 = int_to_ptr.vmem [resolvable:$true] %s1807_s29 }
0x1732   :  { %s2130_s30 = scalar_lea.vmem %s1808_s29, 256  ;;  %p2135_p9 = scmp.lt.s32.totalorder %s1808_s29, %s1808_s29 }
0x1733   :  { %p2131_p8 = scmp.ne.s32.totalorder %s1808_s29, %s2130_s30  ;;  %p2136_p10 = scmp.lt.s32.totalorder %s2130_s30, %s2130_s30 }
0x1735   :  { %p2137_p11 = por %p2136_p10, %p2135_p9 }
0x1737   :  { %p2138_p12 = pnand %p2137_p11, %p2131_p8 }
0x17a2   :  { %v1786_v32 = vpop.permute.xlu0 %1785 }
0x17a3   :  { %1789 = vst.msk [vmem:[#allocation6 + $0x8] sm:$0xff] %vm240_vm11, %v1786_v32 }
0x17a4   :  { %2141 = shalt.err (!%p2138_p12)
}
0x17a5   :  { %s2142_s9 = scalar_lea.hbm %s2711_s7, 256 }
0x17a6   :  { %p2143_p13 = scmp.ne.s32.totalorder %s2711_s7, %s2142_s9  ;;  %p2146_p0 = scmp.lt.u32.totalorder %s2142_s9, %s2711_s7 }
0x17a8   :  { %p2148_p1 = pnand %p2146_p0, %p2143_p13 }
0x17aa   :  { %2151 = shalt.err (!%p2148_p1)
}
0x17ab   :  { %1813 = dma.vmem_to_hbm [thread:$0]  %s1808_s29, 256, %s2711_s7, [#allocation7], %s2162_s26, %s2162_s26, %s2163_s4  }
0x17ac   :  { %2152 = dma.done.wait [#allocation5], 1024  }
0x17ad   :  { %2153 = vsyncadd [#allocation5], 4294966272 }
0x17ae   :  { %2154 = dma.done.wait [#allocation7], 256  }
0x17af   :  { %2155 = vsyncadd [#allocation7], 4294967040 }
0x17b0   :  { %1820 = vsyncpa [#allocation5], 1 }
0x17b1   :  { %1821 = vsyncpa [#allocation7], 1 }

</bundles_post_ra>
